<compile_context>
chip_gen: v6e
topology: v6e:2x2x1
jax: 0.10.0
libtpu: 0.0.40
codegen_flags: <defaults>
</compile_context>

<pallas_src>
import math

import jax
import jax.numpy as jnp
from jax.experimental import pallas as pl
from jax.experimental.pallas import tpu as pltpu


def _round_up(a, b):
    return ((a + b - 1) // b) * b


def _make_conv_kernel(taps, m_rows):
    """Builds the per-(image, O-tile) kernel: sum_t x[shift_t : shift_t+m_rows] @ w[t]."""

    def kernel(x_ref, w_ref, o_ref):
        # x_ref: (1, Hp*W, Cp) bf16   — one image's pixel rows, fetched once per n
        # w_ref: (KH*KW, Cp, o_tile) bf16 — quantized weight, VMEM-resident
        # o_ref: (1, m_rows, o_tile) f32
        acc = None
        for t, shift in enumerate(taps):
            lhs = x_ref[0, shift:shift + m_rows, :]      # static in-VMEM row shift (no HBM re-read)
            d = jnp.dot(lhs, w_ref[t], preferred_element_type=jnp.float32)
            acc = d if acc is None else acc + d
        o_ref[0] = acc

    return kernel


def quant_conv2d(x, weight, k_bits=8):
    """QuantConv2d forward (defaults: stride=1, padding=0, dilation=1, groups=1, no bias)."""
    N, C, H, W = x.shape
    O, Cw, KH, KW = weight.shape
    assert Cw == C, "groups != 1 not supported"
    OH = H - KH + 1
    OW = W - KW + 1

    qmax = 2.0 ** (k_bits - 1) - 1.0
    # --- weight fake-quant, hoisted out of the kernel (GLOBAL abs-max, f32, once) ---
    max_val = jnp.max(jnp.abs(weight)) + 1e-8
    wq = jnp.round(weight * qmax / max_val) * (max_val / qmax)

    Cp = _round_up(C, 8)
    # Keep small O unpadded (single full-width tile, minimal writeback bytes); pad to
    # a 128-multiple only when O is large enough to be worth tiling.
    Op = O if O <= 512 else _round_up(O, 128)

    # (O, C, KH, KW) -> (KH, KW, C, O) -> (KH*KW, Cp, Op), bf16.  Tap order kh-major,
    # matching `taps` below.  NOTE: bf16 weights deviate slightly from the exact f32
    # fake-quant grid (documented; int8+scale path is the TODO above).
    wk = wq.transpose(2, 3, 1, 0).reshape(KH * KW, C, O)
    wk = jnp.pad(wk, ((0, 0), (0, Cp - C), (0, Op - O))).astype(jnp.bfloat16)

    # --- activation: NCHW -> NHWC once, tiny halo/channel pad, flatten pixel rows ---
    pad_h = -(-(KW - 1) // W)                 # rows needed so row-wrapping reads stay in-bounds
    xb = x.transpose(0, 2, 3, 1).astype(jnp.bfloat16)
    xb = jnp.pad(xb, ((0, 0), (0, pad_h), (0, 0), (0, Cp - C)))
    Hp = H + pad_h
    x_flat = xb.reshape(N, Hp * W, Cp)

    # Outputs are computed on an (OH, W) grid: the last KW-1 columns of each output
    # row are garbage (mix pixels across a row boundary) and are sliced away below.
    m_rows = OH * W
    taps = [kh * W + kw for kh in range(KH) for kw in range(KW)]

    # --- chip-aware VMEM budgeting (v7x has only 64 MiB/TC physical) ---
    try:
        vmem_cap = int(pltpu.get_tpu_info().vmem_capacity_bytes)
    except Exception:
        vmem_cap = 64 * 1024 * 1024
    budget = int(0.80 * vmem_cap)

    def footprint(o_t):
        x_bytes = Hp * W * Cp * 2
        w_bytes = KH * KW * Cp * o_t * 2
        o_bytes = m_rows * o_t * 4
        tmp = m_rows * o_t * 4 + 2 * m_rows * Cp * 2     # accumulator + shifted-slice temps
        return 2 * (x_bytes + w_bytes + o_bytes) + tmp    # double-buffered blocks

    o_tile = Op
    if Op > 512 or footprint(o_tile) > budget:
        for cand in (512, 384, 256, 128):
            if Op % cand == 0 and (footprint(cand) <= budget or cand == 128):
                o_tile = cand
                break

    vmem_limit = min(int(0.85 * vmem_cap),
                     max(2 * footprint(o_tile), 32 * 1024 * 1024))

    kernel = _make_conv_kernel(taps, m_rows)
    out = pl.pallas_call(
        kernel,
        out_shape=jax.ShapeDtypeStruct((N, m_rows, Op), jnp.float32),
        grid=(N, Op // o_tile),
        in_specs=[
            # One image's pixel rows; block index constant over j -> fetched once per n.
            pl.BlockSpec((1, Hp * W, Cp), lambda n, j: (n, 0, 0)),
            # Quantized weight; block index constant over n -> not re-DMA'd per image.
            pl.BlockSpec((KH * KW, Cp, o_tile), lambda n, j: (0, 0, j)),
        ],
        out_specs=pl.BlockSpec((1, m_rows, o_tile), lambda n, j: (n, 0, j)),
        compiler_params=pltpu.CompilerParams(
            dimension_semantics=("parallel", "parallel"),
            vmem_limit_bytes=vmem_limit,
        ),
    )(x_flat, wk)

    # (N, OH*W, Op) -> NCHW, dropping per-row garbage columns and O padding.
    # (Module returns NCHW; TODO(synk) above covers fusing this transpose away.)
    out = out.reshape(N, OH, W, Op)[:, :, :OW, :O]
    return out.transpose(0, 3, 1, 2)


if __name__ == "__main__":
    key = jax.random.PRNGKey(0)

    N, Cin, H, W = 2, 4, 16, 16
    Cout, Ksz = 8, 3
    k_bits = 8

    # Deterministic param init, mirroring reset_parameters():
    # n = in_channels * kh * kw ; weight ~ U(-1/sqrt(n), 1/sqrt(n)); bias=False.
    n = Cin * Ksz * Ksz
    stdv = 1.0 / math.sqrt(n)
    kx, kw = jax.random.split(key)
    x = jax.random.normal(kx, (N, Cin, H, W), dtype=jnp.float32)
    weight = jax.random.uniform(
        kw, (Cout, Cin, Ksz, Ksz), minval=-stdv, maxval=stdv, dtype=jnp.float32
    )

    out = quant_conv2d(x, weight, k_bits=k_bits)
    out = jax.block_until_ready(out)

    # Plain-JAX f32 reference of the same forward semantics.
    qmax = 2.0 ** (k_bits - 1) - 1.0
    max_val = jnp.max(jnp.abs(weight)) + 1e-8
    wq = jnp.round(weight * qmax / max_val) * max_val / qmax
    ref = jax.lax.conv_general_dilated(
        x, wq, window_strides=(1, 1), padding="VALID",
        dimension_numbers=("NCHW", "OIHW", "NCHW"),
    )
    assert out.shape == (N, Cout, H - Ksz + 1, W - Ksz + 1)
    # Kernel uses bf16 operands (f32 accumulation) -> loosened tolerance vs f32 ref.
    assert jnp.allclose(out, ref, atol=5e-2, rtol=5e-2)

    print("KERNEL_OK")
</pallas_src>

<mosaic_0001>
module attributes {stable_mosaic.version = 11 : i64} {
  func.func @kernel(%arg0: i32, %arg1: i32, %arg2: memref<1x272x8xbf16, #tpu.memory_space<vmem>>, %arg3: memref<9x8x8xbf16, #tpu.memory_space<vmem>>, %arg4: memref<1x224x8xf32, #tpu.memory_space<vmem>>) attributes {dimension_semantics = [#tpu.dimension_semantics<parallel>, #tpu.dimension_semantics<parallel>], iteration_bounds = array<i64: 2, 1>, scalar_prefetch = 0 : i64, scratch_operands = 0 : i64, tpu.core_type = #tpu.core_type<tc>, window_params = [{transform_indices = @transform_0, window_bounds = array<i64: 1, 272, 8>}, {transform_indices = @transform_1, window_bounds = array<i64: 9, 8, 8>}, {transform_indices = @transform_2, window_bounds = array<i64: 1, 224, 8>}]} {
    %c0 = arith.constant 0 : index
    %c0_0 = arith.constant 0 : index
    %c0_1 = arith.constant 0 : index
    %0 = vector.load %arg2[%c0, %c0_0, %c0_1] : memref<1x272x8xbf16, #tpu.memory_space<vmem>>, vector<1x224x8xbf16>
    %1 = vector.shape_cast %0 : vector<1x224x8xbf16> to vector<224x8xbf16>
    %c0_2 = arith.constant 0 : index
    %c0_3 = arith.constant 0 : index
    %c0_4 = arith.constant 0 : index
    %2 = vector.load %arg3[%c0_2, %c0_3, %c0_4] : memref<9x8x8xbf16, #tpu.memory_space<vmem>>, vector<1x8x8xbf16>
    %3 = vector.shape_cast %2 : vector<1x8x8xbf16> to vector<8x8xbf16>
    %cst = arith.constant dense<0.000000e+00> : vector<224x8xf32>
    %4 = tpu.matmul %1, %3, %cst {dimension_numbers = #tpu.dot_dimension_numbers<[1], [0], [0], [1], [0, 0, 1, 1], [], []>} : vector<224x8xbf16>, vector<8x8xbf16>, vector<224x8xf32> -> vector<224x8xf32>
    %c0_5 = arith.constant 0 : index
    %c1 = arith.constant 1 : index
    %c0_6 = arith.constant 0 : index
    %5 = vector.load %arg2[%c0_5, %c1, %c0_6] : memref<1x272x8xbf16, #tpu.memory_space<vmem>>, vector<1x224x8xbf16>
    %6 = vector.shape_cast %5 : vector<1x224x8xbf16> to vector<224x8xbf16>
    %c1_7 = arith.constant 1 : index
    %c0_8 = arith.constant 0 : index
    %c0_9 = arith.constant 0 : index
    %7 = vector.load %arg3[%c1_7, %c0_8, %c0_9] : memref<9x8x8xbf16, #tpu.memory_space<vmem>>, vector<1x8x8xbf16>
    %8 = vector.shape_cast %7 : vector<1x8x8xbf16> to vector<8x8xbf16>
    %cst_10 = arith.constant dense<0.000000e+00> : vector<224x8xf32>
    %9 = tpu.matmul %6, %8, %cst_10 {dimension_numbers = #tpu.dot_dimension_numbers<[1], [0], [0], [1], [0, 0, 1, 1], [], []>} : vector<224x8xbf16>, vector<8x8xbf16>, vector<224x8xf32> -> vector<224x8xf32>
    %10 = arith.addf %4, %9 : vector<224x8xf32>
    %c0_11 = arith.constant 0 : index
    %c2 = arith.constant 2 : index
    %c0_12 = arith.constant 0 : index
    %11 = vector.load %arg2[%c0_11, %c2, %c0_12] : memref<1x272x8xbf16, #tpu.memory_space<vmem>>, vector<1x224x8xbf16>
    %12 = vector.shape_cast %11 : vector<1x224x8xbf16> to vector<224x8xbf16>
    %c2_13 = arith.constant 2 : index
    %c0_14 = arith.constant 0 : index
    %c0_15 = arith.constant 0 : index
    %13 = vector.load %arg3[%c2_13, %c0_14, %c0_15] : memref<9x8x8xbf16, #tpu.memory_space<vmem>>, vector<1x8x8xbf16>
    %14 = vector.shape_cast %13 : vector<1x8x8xbf16> to vector<8x8xbf16>
    %cst_16 = arith.constant dense<0.000000e+00> : vector<224x8xf32>
    %15 = tpu.matmul %12, %14, %cst_16 {dimension_numbers = #tpu.dot_dimension_numbers<[1], [0], [0], [1], [0, 0, 1, 1], [], []>} : vector<224x8xbf16>, vector<8x8xbf16>, vector<224x8xf32> -> vector<224x8xf32>
    %16 = arith.addf %10, %15 : vector<224x8xf32>
    %c0_17 = arith.constant 0 : index
    %c16 = arith.constant 16 : index
    %c0_18 = arith.constant 0 : index
    %17 = vector.load %arg2[%c0_17, %c16, %c0_18] : memref<1x272x8xbf16, #tpu.memory_space<vmem>>, vector<1x224x8xbf16>
    %18 = vector.shape_cast %17 : vector<1x224x8xbf16> to vector<224x8xbf16>
    %c3 = arith.constant 3 : index
    %c0_19 = arith.constant 0 : index
    %c0_20 = arith.constant 0 : index
    %19 = vector.load %arg3[%c3, %c0_19, %c0_20] : memref<9x8x8xbf16, #tpu.memory_space<vmem>>, vector<1x8x8xbf16>
    %20 = vector.shape_cast %19 : vector<1x8x8xbf16> to vector<8x8xbf16>
    %cst_21 = arith.constant dense<0.000000e+00> : vector<224x8xf32>
    %21 = tpu.matmul %18, %20, %cst_21 {dimension_numbers = #tpu.dot_dimension_numbers<[1], [0], [0], [1], [0, 0, 1, 1], [], []>} : vector<224x8xbf16>, vector<8x8xbf16>, vector<224x8xf32> -> vector<224x8xf32>
    %22 = arith.addf %16, %21 : vector<224x8xf32>
    %c0_22 = arith.constant 0 : index
    %c17 = arith.constant 17 : index
    %c0_23 = arith.constant 0 : index
    %23 = vector.load %arg2[%c0_22, %c17, %c0_23] : memref<1x272x8xbf16, #tpu.memory_space<vmem>>, vector<1x224x8xbf16>
    %24 = vector.shape_cast %23 : vector<1x224x8xbf16> to vector<224x8xbf16>
    %c4 = arith.constant 4 : index
    %c0_24 = arith.constant 0 : index
    %c0_25 = arith.constant 0 : index
    %25 = vector.load %arg3[%c4, %c0_24, %c0_25] : memref<9x8x8xbf16, #tpu.memory_space<vmem>>, vector<1x8x8xbf16>
    %26 = vector.shape_cast %25 : vector<1x8x8xbf16> to vector<8x8xbf16>
    %cst_26 = arith.constant dense<0.000000e+00> : vector<224x8xf32>
    %27 = tpu.matmul %24, %26, %cst_26 {dimension_numbers = #tpu.dot_dimension_numbers<[1], [0], [0], [1], [0, 0, 1, 1], [], []>} : vector<224x8xbf16>, vector<8x8xbf16>, vector<224x8xf32> -> vector<224x8xf32>
    %28 = arith.addf %22, %27 : vector<224x8xf32>
    %c0_27 = arith.constant 0 : index
    %c18 = arith.constant 18 : index
    %c0_28 = arith.constant 0 : index
    %29 = vector.load %arg2[%c0_27, %c18, %c0_28] : memref<1x272x8xbf16, #tpu.memory_space<vmem>>, vector<1x224x8xbf16>
    %30 = vector.shape_cast %29 : vector<1x224x8xbf16> to vector<224x8xbf16>
    %c5 = arith.constant 5 : index
    %c0_29 = arith.constant 0 : index
    %c0_30 = arith.constant 0 : index
    %31 = vector.load %arg3[%c5, %c0_29, %c0_30] : memref<9x8x8xbf16, #tpu.memory_space<vmem>>, vector<1x8x8xbf16>
    %32 = vector.shape_cast %31 : vector<1x8x8xbf16> to vector<8x8xbf16>
    %cst_31 = arith.constant dense<0.000000e+00> : vector<224x8xf32>
    %33 = tpu.matmul %30, %32, %cst_31 {dimension_numbers = #tpu.dot_dimension_numbers<[1], [0], [0], [1], [0, 0, 1, 1], [], []>} : vector<224x8xbf16>, vector<8x8xbf16>, vector<224x8xf32> -> vector<224x8xf32>
    %34 = arith.addf %28, %33 : vector<224x8xf32>
    %c0_32 = arith.constant 0 : index
    %c32 = arith.constant 32 : index
    %c0_33 = arith.constant 0 : index
    %35 = vector.load %arg2[%c0_32, %c32, %c0_33] : memref<1x272x8xbf16, #tpu.memory_space<vmem>>, vector<1x224x8xbf16>
    %36 = vector.shape_cast %35 : vector<1x224x8xbf16> to vector<224x8xbf16>
    %c6 = arith.constant 6 : index
    %c0_34 = arith.constant 0 : index
    %c0_35 = arith.constant 0 : index
    %37 = vector.load %arg3[%c6, %c0_34, %c0_35] : memref<9x8x8xbf16, #tpu.memory_space<vmem>>, vector<1x8x8xbf16>
    %38 = vector.shape_cast %37 : vector<1x8x8xbf16> to vector<8x8xbf16>
    %cst_36 = arith.constant dense<0.000000e+00> : vector<224x8xf32>
    %39 = tpu.matmul %36, %38, %cst_36 {dimension_numbers = #tpu.dot_dimension_numbers<[1], [0], [0], [1], [0, 0, 1, 1], [], []>} : vector<224x8xbf16>, vector<8x8xbf16>, vector<224x8xf32> -> vector<224x8xf32>
    %40 = arith.addf %34, %39 : vector<224x8xf32>
    %c0_37 = arith.constant 0 : index
    %c33 = arith.constant 33 : index
    %c0_38 = arith.constant 0 : index
    %41 = vector.load %arg2[%c0_37, %c33, %c0_38] : memref<1x272x8xbf16, #tpu.memory_space<vmem>>, vector<1x224x8xbf16>
    %42 = vector.shape_cast %41 : vector<1x224x8xbf16> to vector<224x8xbf16>
    %c7 = arith.constant 7 : index
    %c0_39 = arith.constant 0 : index
    %c0_40 = arith.constant 0 : index
    %43 = vector.load %arg3[%c7, %c0_39, %c0_40] : memref<9x8x8xbf16, #tpu.memory_space<vmem>>, vector<1x8x8xbf16>
    %44 = vector.shape_cast %43 : vector<1x8x8xbf16> to vector<8x8xbf16>
    %cst_41 = arith.constant dense<0.000000e+00> : vector<224x8xf32>
    %45 = tpu.matmul %42, %44, %cst_41 {dimension_numbers = #tpu.dot_dimension_numbers<[1], [0], [0], [1], [0, 0, 1, 1], [], []>} : vector<224x8xbf16>, vector<8x8xbf16>, vector<224x8xf32> -> vector<224x8xf32>
    %46 = arith.addf %40, %45 : vector<224x8xf32>
    %c0_42 = arith.constant 0 : index
    %c34 = arith.constant 34 : index
    %c0_43 = arith.constant 0 : index
    %47 = vector.load %arg2[%c0_42, %c34, %c0_43] : memref<1x272x8xbf16, #tpu.memory_space<vmem>>, vector<1x224x8xbf16>
    %48 = vector.shape_cast %47 : vector<1x224x8xbf16> to vector<224x8xbf16>
    %c8 = arith.constant 8 : index
    %c0_44 = arith.constant 0 : index
    %c0_45 = arith.constant 0 : index
    %49 = vector.load %arg3[%c8, %c0_44, %c0_45] : memref<9x8x8xbf16, #tpu.memory_space<vmem>>, vector<1x8x8xbf16>
    %50 = vector.shape_cast %49 : vector<1x8x8xbf16> to vector<8x8xbf16>
    %cst_46 = arith.constant dense<0.000000e+00> : vector<224x8xf32>
    %51 = tpu.matmul %48, %50, %cst_46 {dimension_numbers = #tpu.dot_dimension_numbers<[1], [0], [0], [1], [0, 0, 1, 1], [], []>} : vector<224x8xbf16>, vector<8x8xbf16>, vector<224x8xf32> -> vector<224x8xf32>
    %52 = arith.addf %46, %51 : vector<224x8xf32>
    %c0_47 = arith.constant 0 : index
    %c0_48 = arith.constant 0 : index
    %c0_49 = arith.constant 0 : index
    %53 = vector.load %arg4[%c0_47, %c0_48, %c0_49] : memref<1x224x8xf32, #tpu.memory_space<vmem>>, vector<1x224x8xf32>
    %54 = vector.shape_cast %53 : vector<1x224x8xf32> to vector<224x8xf32>
    %55 = vector.shape_cast %52 : vector<224x8xf32> to vector<1x224x8xf32>
    tpu.vector_store %arg4[%c0_47, %c0_48, %c0_49], %55 {strides = array<i32>} : memref<1x224x8xf32, #tpu.memory_space<vmem>>, vector<1x224x8xf32>,
    return
  }
  func.func @transform_0(%arg0: i32, %arg1: i32) -> (i32, i32, i32) {
    %c0_i32 = arith.constant 0 : i32
    %c0_i32_0 = arith.constant 0 : i32
    %c0_i32_1 = arith.constant 0 : i32
    return %arg0, %c0_i32, %c0_i32_0 : i32, i32, i32
  }
  func.func @transform_1(%arg0: i32, %arg1: i32) -> (i32, i32, i32) {
    %c0_i32 = arith.constant 0 : i32
    %c0_i32_0 = arith.constant 0 : i32
    %c0_i32_1 = arith.constant 0 : i32
    return %c0_i32, %c0_i32_0, %arg1 : i32, i32, i32
  }
  func.func @transform_2(%arg0: i32, %arg1: i32) -> (i32, i32, i32) {
    %c0_i32 = arith.constant 0 : i32
    %c0_i32_0 = arith.constant 0 : i32
    return %arg0, %c0_i32, %arg1 : i32, i32, i32
  }
}

</mosaic_0001>

<bundles_post_ra>
// kernel: tpu_custom_call.1
= control target key start
LH: loop header
LB: loop body
LE: loop exit
PB: predicated region body
PF: predicated region fallthrough
CT: control target
= control target key end

     0   :  { %s3943_s9 = smov 0   ;;  %s3945_s10 = smov 0   ;;  %s5032_s0 = inlined_call_operand.vmem [shape: bf16[2,272,8], index: 0, kind: input, shape index: {}]   ;;  %s5033_s1 = inlined_call_operand.vmem [shape: bf16[9,8,8], index: 1, kind: input, shape index: {}]   ;;  %s5034_s2 = inlined_call_operand.vmem [shape: f32[2,224,8], index: 2, kind: output, shape index: {}]  }
   0x1   :  { %s3947_s11 = smov 0  }
   0x2 LB: > { %s24_s12 = sadd.s32 1, %s3922_s10  ;;  %p3170_p0 = scmp.ge.s32.totalorder %s3926_s11, 1  ;;  %s3926_s11 = sphi %s3947_s11, %s12_s11   ;;  %s3922_s10 = sphi %s3945_s10, %s5098_s10   ;;  %s3918_s9 = sphi %s3943_s9, %s5097_s9  }
   0x3   : > { %p26_p1 = scmp.ge.s32.totalorder %s24_s12, 2  ;;  %p135_p2 = scmp.lt.s32.totalorder %s3926_s11, 3 }
   0x5   : > { %s5100_s12 = smov (%p26_p1, %s24_s12), 0  ;;  %p136_p3 = pnand %p3170_p0, %p135_p2 }
   0x7   : > { %139 = sbr.rel (%p136_p3) target bundleno = 479 (0x1df), region = 28 }
   0xc   : > { %v3173_v0 = vld [vmem:[%s5033_s1 + $0x4] sm:$0xf]  ;;  %vm447_vm0 = vcmask 1043456   ;;  %p164_p4 = scmp.lt.s32.totalorder %s3918_s9, 1  ;;  %v3217_v2 = vld [vmem:[%s5033_s1 + $0x8] sm:$0xf] }
   0xd   : > { %3792 = vmatprep.subr.msk.bf16.mxu0 %vm447_vm0, %v3173_v0  ;;  %3793 = vmatprep.subr.msk.bf16.mxu1 %vm447_vm0, %v3173_v0  ;;  %v449_v1 = vsel %vm447_vm0, %v3173_v0, 0  ;;  %v210_v3 = vld [vmem:[%s5033_s1] sm:$0xf]  ;;  %vm287_vm1 = vsmask.f32 7424  ;;  %vm404_vm2 = vcmask 64512  }
   0xe   : > { %3521 = vmatpush3.bf16.msra.mxu0 %v449_v1  ;;  %3791 = vmatpush3.bf16.msra.mxu1 %v449_v1  ;;  %s5102_s9 = smov (!%p164_p4, %s3918_s9), 1  ;;  %v851_v8 = vsel %vm447_vm0, %v3217_v2, 0  ;;  %v625_v16 = vsel %vm447_vm0, %v210_v3, 0  ;;  %v4026_v33 = vld [vmem:[%s5033_s1 + $0x10] sm:$0xf]  ;;  %vm778_vm3 = vcmask 1046528  }
   0xf   : > { %3795 = vmatprep.subr.msk.bf16.mxu0 %vm447_vm0, %v3217_v2  ;;  %3794 = vmatprep.subr.msk.bf16.mxu1 %vm447_vm0, %v210_v3  ;;  %s3802_s19 = smul.u32 136, %s5102_s9  ;;  %v4046_v45 = vld [vmem:[%s5033_s1 + $0xc] sm:$0xf] }
  0x10   : > { %s3803_s7 = smul.u32 224, %s5102_s9 }
  0x11   : > { %s3981_s22 = scalar_lea.vmem %s5032_s0, %s3802_s19 }
  0x12   : > { %v182_v4 = vld [vmem:[%s3981_s22] sm:$0xf]  ;;  %v3985_v5 = vld [vmem:[%s3981_s22 + $0x4] sm:$0xf]  ;;  %v3991_v7 = vld [vmem:[%s3981_s22 + $0x8] sm:$0xff]   ;;  %s4890_s14 = scalar_lea.vmem %s5034_s2, %s3803_s7 }
  0x13   : > { %v3988_v6 = vcombine.low %v182_v4, %v3985_v5  ;;  %v296_v11 = vshll.u32 %v3991_v7, 16  ;;  %v300_v12 = vshrl.u32 %v3991_v7, 16  ;;  %v3999_v13 = vld [vmem:[%s3981_s22 + $0x40] sm:$0xff]   ;;  %v4002_v14 = vld [vmem:[%s3981_s22 + $0x48] sm:$0xff]   ;;  %v4005_v15 = vld [vmem:[%s3981_s22 + $0x10] sm:$0xff]  }
  0x14   : > { %v352_v19 = vshll.u32 %v3999_v13, 16  ;;  %v356_v20 = vshrl.u32 %v3999_v13, 16  ;;  %v360_v21 = vshll.u32 %v4002_v14, 16  ;;  %v364_v22 = vshrl.u32 %v4002_v14, 16  ;;  %v4014_v24 = vld [vmem:[%s3981_s22 + $0x50] sm:$0xff]   ;;  %v4019_v28 = vld [vmem:[%s3981_s22 + $0x18] sm:$0xff]  }
  0x15   : > { %v289_v9 = vshrl.u32 %v3988_v6, 16  ;;  %v291_v10 = vshll.u32 %v3988_v6, 16  ;;  %v298_v18 = vrot.slane %v296_v11, 1  ;;  %v304_v23 = vshll.u32 %v4005_v15, 16  ;;  %v4032_v37 = vld [vmem:[%s3981_s22 + $0x58] sm:$0xff]   ;;  %v4036_v39 = vld [vmem:[%s3981_s22 + $0x20] sm:$0xff]  }
  0x16   : > { %v4016_v27 = vrot.slane %v352_v19, 1  ;;  %v362_v29 = vrot.slane %v360_v21, 1  ;;  %v368_v31 = vshll.u32 %v4014_v24, 16  ;;  %v308_v32 = vshrl.u32 %v4005_v15, 16  ;;  %v4041_v44 = vld [vmem:[%s3981_s22 + $0x60] sm:$0xff]   ;;  %v4053_v50 = vld [vmem:[%s3981_s22 + $0x28] sm:$0xff]  }
  0x17   : > { %v293_v17 = vrot.slane %v291_v10, 1  ;;  %v302_v26 = vor.u32 %v300_v12, %v298_v18  ;;  %v306_v30 = vrot.slane %v304_v23, 1  ;;  %v312_v36 = vshll.u32 %v4019_v28, 16  ;;  %v4068_v62 = vld [vmem:[%s3981_s22 + $0x68] sm:$0xff]   ;;  %v4078_v10 = vld [vmem:[%s3981_s22 + $0x30] sm:$0xff]   ;;  %v4081_v11 = vld [vmem:[%s3981_s22 + $0x38] sm:$0xff]  }
  0x18   : > { %v358_v35 = vor.u32 %v356_v20, %v4016_v27  ;;  %v372_v38 = vshrl.u32 %v4014_v24, 16  ;;  %v366_v40 = vor.u32 %v364_v22, %v362_v29  ;;  %v370_v42 = vrot.slane %v368_v31, 1 }
  0x19   : > { %v294_v25 = vor.u32 %v293_v17, %v289_v9  ;;  %v307_v41 = vsel %vm287_vm1, %v302_v26, %v306_v30  ;;  %v310_v43 = vor.u32 %v308_v32, %v306_v30  ;;  %v314_v47 = vrot.slane %v312_v36, 1  ;;  %v4085_v17 = vld [vmem:[%s3981_s22 + $0x70] ss:$0 sps:$4 sm:$0x11]  }
  0x1a   : > { %v363_v46 = vsel %vm287_vm1, %v358_v35, %v362_v29  ;;  %v376_v48 = vshll.u32 %v4032_v37, 16  ;;  %v316_v49 = vshrl.u32 %v4019_v28, 16  ;;  %v371_v51 = vsel %vm287_vm1, %v366_v40, %v370_v42 }
  0x1b   : > { %v299_v34 = vsel %vm287_vm1, %v294_v25, %v298_v18  ;;  %3538 = vmatprep.mubr.msk.bf16.mxu1 %vm404_vm2, %v363_v46  ;;  %v374_v52 = vor.u32 %v372_v38, %v370_v42  ;;  %v320_v53 = vshll.u32 %v4036_v39, 16  ;;  %v380_v54 = vshrl.u32 %v4032_v37, 16 }
  0x1c   : > { %3522 = vmatprep.mubr.msk.bf16.mxu0 %vm404_vm2, %v299_v34  ;;  %3539 = vmatmul.mubr.msk.bf16.vlgmr.msra.gmra.mxu1 %vm404_vm2, %v371_v51  ;;  %v315_v55 = vsel %vm287_vm1, %v310_v43, %v314_v47  ;;  %v378_v56 = vrot.slane %v376_v48, 1  ;;  %v318_v57 = vor.u32 %v316_v49, %v314_v47  ;;  %v384_v58 = vshll.u32 %v4041_v44, 16  ;;  %v772_v34 = vld [vmem:[%s3981_s22] sm:$0xe] }
  0x1d   : > { %3523 = vmatmul.mubr.msk.bf16.vlgmr.msra.gmra.mxu0 %vm404_vm2, %v307_v41  ;;  %3551 = vmatpush3.bf16.msra.mxu1 %v625_v16  ;;  %v322_v59 = vrot.slane %v320_v53, 1  ;;  %v324_v60 = vshrl.u32 %v4036_v39, 16  ;;  %v328_v61 = vshll.u32 %v4053_v50, 16  ;;  %v388_v2 = vshrl.u32 %v4041_v44, 16 }
  0x1e   : > { %3581 = vmatpush3.bf16.msra.mxu0 %v851_v8  ;;  %3526 = vmatprep.mubr.msk.bf16.mxu0 %vm404_vm2, %v315_v55  ;;  %v379_v63 = vsel %vm287_vm1, %v374_v52, %v378_v56  ;;  %v382_v0 = vor.u32 %v380_v54, %v378_v56  ;;  %v386_v1 = vrot.slane %v384_v58, 1  ;;  %v392_v9 = vshll.u32 %v4068_v62, 16  ;;  %v4121_v54 = vld [vmem:[%s5033_s1 + $0x14] sm:$0xf] }
  0x1f   : > { %3797 = vmatprep.subr.msk.bf16.mxu0 %vm447_vm0, %v4026_v33  ;;  %3796 = vmatprep.subr.msk.bf16.mxu1 %vm447_vm0, %v4046_v45  ;;  %v323_v3 = vsel %vm287_vm1, %v318_v57, %v322_v59  ;;  %v326_v4 = vor.u32 %v324_v60, %v322_v59  ;;  %v330_v8 = vrot.slane %v328_v61, 1  ;;  %v332_v16 = vshrl.u32 %v4053_v50, 16 }
  0x20   : > { %3542 = vmatprep.mubr.msk.bf16.mxu1 %vm404_vm2, %v379_v63  ;;  %v390_v12 = vor.u32 %v388_v2, %v386_v1  ;;  %v396_v18 = vshrl.u32 %v4068_v62, 16  ;;  %v387_v19 = vsel %vm287_vm1, %v382_v0, %v386_v1  ;;  %v394_v21 = vrot.slane %v392_v9, 1  ;;  %v1344_v1 = vld [vmem:[%s3981_s22 + $0x8] sm:$0xf] }
  0x21   : > { %v331_v20 = vsel %vm287_vm1, %v326_v4, %v330_v8  ;;  %v336_v22 = vshll.u32 %v4078_v10, 16  ;;  %v400_v23 = vshll.u32 %v4085_v17, 16  ;;  %v340_v25 = vshrl.u32 %v4078_v10, 16 }
  0x22   : > { %v344_v26 = vshll.u32 %v4081_v11, 16  ;;  %v395_v29 = vsel %vm287_vm1, %v390_v12, %v394_v21  ;;  %v334_v30 = vor.u32 %v332_v16, %v330_v8  ;;  %v398_v35 = vor.u32 %v396_v18, %v394_v21  ;;  %v4204_v21 = vld [vmem:[%s3981_s22 + $0x18] sm:$0xff]  }
  0x23   : > { %v338_v31 = vrot.slane %v336_v22, 1  ;;  %v402_v36 = vrot.slane %v400_v23, 1  ;;  %v348_v41 = vshrl.u32 %v4081_v11, 16  ;;  %v3218_v43 = vcombine.low %v772_v34, %v3985_v5  ;;  %v4211_v23 = vld [vmem:[%s3981_s22 + $0x20] sm:$0xff]  }
  0x24   : > { %3543 = vmatmul.mubr.msk.bf16.gmra.mxu1 %vm404_vm2, %v387_v19  ;;  %v346_v32 = vrot.slane %v344_v26, 1  ;;  %v780_v49 = vrot.slane %v3991_v7, 1  ;;  %v1169_v52 = vsel %vm447_vm0, %v4046_v45, 0  ;;  %v782_v53 = vrot.slane %v4005_v15, 1 }
  0x25   : > { %3527 = vmatmul.mubr.msk.bf16.gmra.mxu0 %vm404_vm2, %v323_v3  ;;  %3546 = vmatprep.mubr.msk.bf16.mxu1 %vm404_vm2, %v395_v29  ;;  %v342_v38 = vor.u32 %v340_v25, %v338_v31  ;;  %v339_v40 = vsel %vm287_vm1, %v334_v30, %v338_v31  ;;  %v403_v46 = vsel %vm287_vm1, %v398_v35, %v402_v36  ;;  %v779_v48 = vrot.slane %v3218_v43, 1  ;;  %v4180_v3 = vld [vmem:[%s3981_s22 + $0xc] sm:$0xf]  ;;  %v3845_v30 = vld [vmem:[%s3981_s22 + $0x10] sm:$0xff]  }
  0x26   : > { %3530 = vmatprep.mubr.msk.bf16.mxu0 %vm404_vm2, %v331_v20  ;;  %v350_v47 = vor.u32 %v348_v41, %v346_v32  ;;  %v1607_v45 = vsel %vm447_vm0, %v4026_v33, 0  ;;  %v788_v56 = vrot.slane %v4053_v50, 1  ;;  %v790_v58 = vrot.slane %v4078_v10, 1  ;;  %v3844_v20 = vld [vmem:[%s3981_s22 + $0x8] sm:$0xff]   ;;  %v4236_v43 = vld [vmem:[%s3981_s22 + $0x30] sm:$0xff]  }
  0x27   : > { %v347_v42 = vsel %vm287_vm1, %v342_v38, %v346_v32  ;;  %v781_v5 = vsel %vm778_vm3, %v779_v48, %v780_v49  ;;  %v794_v60 = vrot.slane %v3999_v13, 1  ;;  %v798_v0 = vrot.slane %v4014_v24, 1  ;;  %v3846_v32 = vld [vmem:[%s3981_s22 + $0x18] sm:$0xff]   ;;  %v4226_v36 = vld [vmem:[%s3981_s22 + $0x28] sm:$0xff]  }
  0x28   : > { %v355_v51 = vsel %vm287_vm1, %v350_v47, %v4016_v27  ;;  %v783_v27 = vsel %vm778_vm3, %v780_v49, %v782_v53  ;;  %v800_v2 = vrot.slane %v4032_v37, 1  ;;  %v3263_v4 = vcombine.low %v1344_v1, %v4180_v3  ;;  %v3849_v49 = vld [vmem:[%s3981_s22 + $0x20] sm:$0xff]  }
  0x29   : > { %v804_v9 = vrot.slane %v4068_v62, 1  ;;  %v1464_v25 = vshll.u32 %v4204_v21, 16  ;;  %v1468_v31 = vshrl.u32 %v4204_v21, 16  ;;  %v1860_v34 = vsel %vm447_vm0, %v4121_v54, 0 }
  0x2a   : > { %v801_v8 = vsel %vm778_vm3, %v798_v0, %v800_v2  ;;  %v1449_v12 = vshrl.u32 %v3263_v4, 16  ;;  %v1476_v48 = vshrl.u32 %v4211_v23, 16 }
  0x2b   : > { %v1466_v35 = vrot.slane %v1464_v25, 1 }
  0x2c   : > { %3547 = vmatmul.mubr.msk.bf16.gmra.mxu1 %vm404_vm2, %v403_v46  ;;  %v1480_v46 = vshll.u32 %v4226_v36, 16 }
  0x2d   : > { %3531 = vmatmul.mubr.msk.bf16.gmra.mxu0 %vm404_vm2, %v339_v40  ;;  %3552 = vmatprep.mubr.msk.bf16.mxu1 %vm404_vm2, %v3988_v6  ;;  %v784_v6 = vrot.slane %v4019_v28, 1  ;;  %v4232_v40 = vld [vmem:[%s5033_s1 + $0x1c] sm:$0xf]  ;;  %v1470_v41 = vor.u32 %v1468_v31, %v1466_v35 }
  0x2e   : > { %3534 = vmatprep.mubr.msk.bf16.mxu0 %vm404_vm2, %v347_v42 }
  0x2f   : > { %v785_v55 = vsel %vm778_vm3, %v782_v53, %v784_v6  ;;  %v1488_v53 = vshll.u32 %v4236_v43, 16 }
  0x34   : > { %3553 = vmatmul.mubr.msk.bf16.vlgmr.msra.gmra.mxu1 %vm404_vm2, %v3991_v7  ;;  %v4138_v7 = vld [vmem:[%s5033_s1 + $0x18] sm:$0xf] }
  0x35   : > { %3535 = vmatmul.mubr.msk.bf16.gmra.mxu0 %vm404_vm2, %v355_v51  ;;  %3611 = vmatpush3.bf16.msra.mxu1 %v1169_v52  ;;  %v2178_v51 = vsel %vm447_vm0, %v4138_v7, 0  ;;  %v1484_v52 = vshrl.u32 %v4226_v36, 16 }
  0x36   : > { %3582 = vmatprep.mubr.msk.bf16.mxu0 %vm404_vm2, %v781_v5  ;;  %3556 = vmatprep.mubr.msk.bf16.mxu1 %vm404_vm2, %v4005_v15  ;;  %v786_v15 = vrot.slane %v4036_v39, 1 }
  0x37   : > { %3798 = vmatprep.subr.msk.bf16.mxu1 %vm447_vm0, %v4121_v54  ;;  %v3851_v54 = vld [vmem:[%s3981_s22 + $0x28] sm:$0xff]  }
  0x38   : > { %v787_v33 = vsel %vm778_vm3, %v784_v6, %v786_v15  ;;  %v789_v57 = vsel %vm778_vm3, %v786_v15, %v788_v56  ;;  %v4254_v6 = vld [vmem:[%s5033_s1 + $0x20] sm:$0xf]  ;;  %v1490_v15 = vrot.slane %v1488_v53, 1 }
  0x3c   : > { %3557 = vmatmul.mubr.msk.bf16.gmra.mxu1 %vm404_vm2, %v4019_v28  ;;  %v792_v28 = vrot.slane %v4081_v11, 1 }
  0x3d   : > { %3583 = vmatmul.mubr.msk.bf16.vlgmr.msra.gmra.mxu0 %vm404_vm2, %v783_v27  ;;  %3560 = vmatprep.mubr.msk.bf16.mxu1 %vm404_vm2, %v4036_v39  ;;  %v791_v39 = vsel %vm778_vm3, %v788_v56, %v790_v58  ;;  %v1482_v27 = vrot.slane %v1480_v46, 1  ;;  %v4263_v56 = vld [vmem:[%s3981_s22 + $0x40] sm:$0xff]   ;;  %v4319_v46 = vld [vmem:[%s3981_s22 + $0x70] sm:$0xff]  }
  0x3e   : > { %3641 = vmatpush3.bf16.msra.mxu0 %v1607_v45  ;;  %3586 = vmatprep.mubr.msk.bf16.mxu0 %vm404_vm2, %v785_v55  ;;  %v793_v59 = vsel %vm778_vm3, %v790_v58, %v792_v28  ;;  %v795_v61 = vsel %vm778_vm3, %v792_v28, %v794_v60  ;;  %v4258_v45 = vld [vmem:[%s3981_s22 + $0x38] sm:$0xff]   ;;  %v1492_v58 = vshrl.u32 %v4236_v43, 16  ;;  %v3853_v28 = vld [vmem:[%s3981_s22 + $0x30] sm:$0xff]  }
  0x3f   : > { %3799 = vmatprep.subr.msk.bf16.mxu0 %vm447_vm0, %v4138_v7  ;;  %v1486_v7 = vor.u32 %v1484_v52, %v1482_v27 }
  0x44   : > { %3561 = vmatmul.mubr.msk.bf16.gmra.mxu1 %vm404_vm2, %v4053_v50  ;;  %v796_v50 = vrot.slane %v4002_v14, 1 }
  0x45   : > { %3587 = vmatmul.mubr.msk.bf16.gmra.mxu0 %vm404_vm2, %v787_v33  ;;  %3564 = vmatprep.mubr.msk.bf16.mxu1 %vm404_vm2, %v4078_v10  ;;  %v4192_v10 = vld [vmem:[%s3981_s22 + $0x10] sm:$0xff]   ;;  %v1496_v33 = vshll.u32 %v4258_v45, 16 }
  0x46   : > { %3590 = vmatprep.mubr.msk.bf16.mxu0 %vm404_vm2, %v789_v57  ;;  %v797_v63 = vsel %vm778_vm3, %v794_v60, %v796_v50  ;;  %v1456_v18 = vshll.u32 %v4192_v10, 16  ;;  %v1460_v29 = vshrl.u32 %v4192_v10, 16  ;;  %v1504_v60 = vshll.u32 %v4263_v56, 16 }
  0x48   : > { %v1458_v22 = vrot.slane %v1456_v18, 1 }
  0x4a   : > { %v1462_v38 = vor.u32 %v1460_v29, %v1458_v22 }
  0x4c   : > { %3565 = vmatmul.mubr.msk.bf16.gmra.mxu1 %vm404_vm2, %v4081_v11  ;;  %v1451_v11 = vshll.u32 %v3263_v4, 16  ;;  %v1467_v47 = vsel %vm287_vm1, %v1462_v38, %v1466_v35  ;;  %v4314_v35 = vld [vmem:[%s3981_s22 + $0x68] sm:$0xff]  }
  0x4d   : > { %3591 = vmatmul.mubr.msk.bf16.gmra.mxu0 %vm404_vm2, %v791_v39  ;;  %3568 = vmatprep.mubr.msk.bf16.mxu1 %vm404_vm2, %v3999_v13  ;;  %v799_v13 = vsel %vm778_vm3, %v796_v50, %v798_v0  ;;  %v1491_v39 = vsel %vm287_vm1, %v1486_v7, %v1490_v15  ;;  %v3855_v50 = vld [vmem:[%s3981_s22 + $0x38] sm:$0xff]   ;;  %v1494_v0 = vor.u32 %v1492_v58, %v1490_v15  ;;  %v1548_v53 = vshrl.u32 %v4314_v35, 16 }
  0x4e   : > { %3594 = vmatprep.mubr.msk.bf16.mxu0 %vm404_vm2, %v793_v59  ;;  %v1453_v16 = vrot.slane %v1451_v11, 1  ;;  %v1500_v59 = vshrl.u32 %v4258_v45, 16 }
  0x54   : > { %3569 = vmatmul.mubr.msk.bf16.gmra.mxu1 %vm404_vm2, %v4002_v14  ;;  %v802_v14 = vrot.slane %v4041_v44, 1 }
  0x55   : > { %3595 = vmatmul.mubr.msk.bf16.gmra.mxu0 %vm404_vm2, %v795_v61  ;;  %3572 = vmatprep.mubr.msk.bf16.mxu1 %vm404_vm2, %v4014_v24  ;;  %v1498_v61 = vrot.slane %v1496_v33, 1  ;;  %v4335_v33 = vld [vmem:[%s3981_s22 + $0x78] ss:$0 sps:$4 sm:$0x11]  }
  0x56   : > { %3598 = vmatprep.mubr.msk.bf16.mxu0 %vm404_vm2, %v797_v63  ;;  %v803_v24 = vsel %vm778_vm3, %v800_v2, %v802_v14  ;;  %v805_v19 = vsel %vm778_vm3, %v802_v14, %v804_v9  ;;  %v4278_v63 = vld [vmem:[%s3981_s22 + $0x48] sm:$0xff]   ;;  %v1506_v2 = vrot.slane %v1504_v60, 1  ;;  %v1508_v14 = vshrl.u32 %v4263_v56, 16 }
  0x57   : > { %v1502_v1 = vor.u32 %v1500_v59, %v1498_v61  ;;  %v1512_v4 = vshll.u32 %v4278_v63, 16  ;;  %v1556_v60 = vshrl.u32 %v4319_v46, 16 }
  0x59   : > { %v1507_v11 = vsel %vm287_vm1, %v1502_v1, %v1506_v2  ;;  %v1514_v18 = vrot.slane %v1512_v4, 1  ;;  %v1793_v4 = vrot.slane %v4211_v23, 1 }
  0x5c   : > { %3573 = vmatmul.mubr.msk.bf16.gmra.mxu1 %vm404_vm2, %v4032_v37  ;;  %v806_v37 = vrot.slane %v4085_v17, 1 }
  0x5d   : > { %3599 = vmatmul.mubr.msk.bf16.gmra.mxu0 %vm404_vm2, %v799_v13  ;;  %3576 = vmatprep.mubr.msk.bf16.mxu1 %vm404_vm2, %v4041_v44  ;;  %v1454_v44 = vor.u32 %v1453_v16, %v1449_v12  ;;  %v4283_v13 = vld [vmem:[%s3981_s22 + $0x50] sm:$0xff]   ;;  %v3859_v16 = vld [vmem:[%s3981_s22 + $0x48] sm:$0xff]  }
  0x5e   : > { %3602 = vmatprep.mubr.msk.bf16.mxu0 %vm404_vm2, %v801_v8  ;;  %v807_v26 = vsel %vm778_vm3, %v804_v9, %v806_v37  ;;  %v1499_v8 = vsel %vm287_vm1, %v1494_v0, %v1498_v61  ;;  %v3857_v9 = vld [vmem:[%s3981_s22 + $0x40] sm:$0xff]   ;;  %v1520_v12 = vshll.u32 %v4283_v13, 16  ;;  %v1524_v29 = vshrl.u32 %v4283_v13, 16 }
  0x5f   : > { %v1459_v17 = vsel %vm287_vm1, %v1454_v44, %v1458_v22  ;;  %v4301_v22 = vld [vmem:[%s3981_s22 + $0x60] sm:$0xff]  }
  0x60   : > { %v1522_v44 = vrot.slane %v1520_v12, 1  ;;  %v1797_v12 = vrot.slane %v4236_v43, 1  ;;  %v3877_v43 = vld [vmem:[%s3981_s22 + $0x28] sm:$0xff]  }
  0x62   : > { %v1526_v38 = vor.u32 %v1524_v29, %v1522_v44  ;;  %v3880_v29 = vld [vmem:[%s3981_s22 + $0x40] sm:$0xff]  }
  0x64   : > { %3577 = vmatmul.mubr.msk.bf16.gmra.mxu1 %vm404_vm2, %v4068_v62  ;;  %v1472_v62 = vshll.u32 %v4211_v23, 16  ;;  %v3875_v23 = vld [vmem:[%s3981_s22 + $0x18] sm:$0xff]  }
  0x65   : > { %3603 = vmatmul.mubr.msk.bf16.gmra.mxu0 %vm404_vm2, %v803_v24  ;;  %3612 = vmatprep.mubr.msk.bf16.mxu1 %vm404_vm2, %v3844_v20  ;;  %v1516_v24 = vshrl.u32 %v4278_v63, 16  ;;  %v1510_v20 = vor.u32 %v1508_v14, %v1506_v2  ;;  %v3874_v14 = vld [vmem:[%s3981_s22 + $0x10] sm:$0xff]  }
  0x66   : > { %3606 = vmatprep.mubr.msk.bf16.mxu0 %vm404_vm2, %v805_v19  ;;  %v1474_v42 = vrot.slane %v1472_v62, 1  ;;  %v4296_v19 = vld [vmem:[%s3981_s22 + $0x58] sm:$0xff]   ;;  %v1536_v62 = vshll.u32 %v4301_v22, 16 }
  0x67   : > { %v1518_v37 = vor.u32 %v1516_v24, %v1514_v18  ;;  %v1528_v25 = vshll.u32 %v4296_v19, 16  ;;  %v1532_v31 = vshrl.u32 %v4296_v19, 16 }
  0x68   : > { %v1475_v5 = vsel %vm287_vm1, %v1470_v41, %v1474_v42  ;;  %v1478_v55 = vor.u32 %v1476_v48, %v1474_v42  ;;  %v1538_v42 = vrot.slane %v1536_v62, 1  ;;  %v3882_v62 = vld [vmem:[%s3981_s22 + $0x50] sm:$0xff]  }
  0x6a   : > { %v1483_v57 = vsel %vm287_vm1, %v1478_v55, %v1482_v27  ;;  %v3867_v27 = vld [vmem:[%s3981_s22 + $0x68] sm:$0xff]  }
  0x6c   : > { %3613 = vmatmul.mubr.msk.bf16.vlgmr.msra.gmra.mxu1 %vm404_vm2, %v3845_v30  ;;  %v3861_v30 = vld [vmem:[%s3981_s22 + $0x50] sm:$0xff]  }
  0x6d   : > { %3607 = vmatmul.mubr.msk.bf16.gmra.mxu0 %vm404_vm2, %v807_v26  ;;  %3671 = vmatpush3.bf16.msra.mxu1 %v1860_v34  ;;  %v1515_v26 = vsel %vm287_vm1, %v1510_v20, %v1514_v18  ;;  %v1530_v34 = vrot.slane %v1528_v25, 1 }
  0x6e   : > { %3642 = vmatprep.mubr.msk.bf16.mxu0 %vm404_vm2, %v1459_v17  ;;  %3616 = vmatprep.mubr.msk.bf16.mxu1 %vm404_vm2, %v3846_v32  ;;  %v1523_v17 = vsel %vm287_vm1, %v1518_v37, %v1522_v44  ;;  %v3863_v32 = vld [vmem:[%s3981_s22 + $0x58] sm:$0xff]   ;;  %v3878_v37 = vld [vmem:[%s3981_s22 + $0x30] sm:$0xff]  }
  0x6f   : > { %3800 = vmatprep.subr.msk.bf16.mxu1 %vm447_vm0, %v4232_v40  ;;  %v1534_v41 = vor.u32 %v1532_v31, %v1530_v34  ;;  %v1531_v48 = vsel %vm287_vm1, %v1526_v38, %v1530_v34  ;;  %v1807_v31 = vrot.slane %v4296_v19, 1  ;;  %v2354_v34 = vld [vmem:[%s3981_s22 + $0x14] sm:$0xf]  ;;  %v1811_v19 = vrot.slane %v4314_v35, 1 }
  0x71   : > { %v1539_v52 = vsel %vm287_vm1, %v1534_v41, %v1538_v42 }
  0x74   : > { %3617 = vmatmul.mubr.msk.bf16.gmra.mxu1 %vm404_vm2, %v3849_v49  ;;  %v1540_v49 = vshrl.u32 %v4301_v22, 16 }
  0x75   : > { %3643 = vmatmul.mubr.msk.bf16.vlgmr.msra.gmra.mxu0 %vm404_vm2, %v1467_v47  ;;  %3620 = vmatprep.mubr.msk.bf16.mxu1 %vm404_vm2, %v3851_v54  ;;  %v1544_v47 = vshll.u32 %v4314_v35, 16  ;;  %v1552_v54 = vshll.u32 %v4319_v46, 16 }
  0x76   : > { %3701 = vmatpush3.bf16.msra.mxu0 %v2178_v51  ;;  %3646 = vmatprep.mubr.msk.bf16.mxu0 %vm404_vm2, %v1475_v5  ;;  %v1782_v51 = vld [vmem:[%s3981_s22 + $0x8] sm:$0xe]  ;;  %v3865_v5 = vld [vmem:[%s3981_s22 + $0x60] sm:$0xff]   ;;  %v1542_v15 = vor.u32 %v1540_v49, %v1538_v42 }
  0x77   : > { %3801 = vmatprep.subr.msk.bf16.mxu0 %vm447_vm0, %v4254_v6  ;;  %v1546_v55 = vrot.slane %v1544_v47, 1  ;;  %v3293_v7 = vcombine.low %v1782_v51, %v4180_v3  ;;  %v1554_v58 = vrot.slane %v1552_v54, 1  ;;  %v1560_v3 = vshll.u32 %v4335_v33, 16  ;;  %v3884_v51 = vld [vmem:[%s3981_s22 + $0x60] sm:$0xff]  }
  0x78   : > { %v1813_v47 = vrot.slane %v4319_v46, 1  ;;  %v3890_v46 = vld [vmem:[%s3981_s22 + $0x20] sm:$0xff]  }
  0x79   : > { %v1547_v59 = vsel %vm287_vm1, %v1542_v15, %v1546_v55  ;;  %v1558_v1 = vor.u32 %v1556_v60, %v1554_v58  ;;  %v1562_v2 = vrot.slane %v1560_v3, 1 }
  0x7c   : > { %3621 = vmatmul.mubr.msk.bf16.gmra.mxu1 %vm404_vm2, %v3853_v28  ;;  %v1788_v28 = vrot.slane %v3293_v7, 1  ;;  %v3885_v7 = vld [vmem:[%s3981_s22 + $0x68] sm:$0xff]  }
  0x7d   : > { %3647 = vmatmul.mubr.msk.bf16.gmra.mxu0 %vm404_vm2, %v1483_v57  ;;  %3624 = vmatprep.mubr.msk.bf16.mxu1 %vm404_vm2, %v3855_v50  ;;  %v1550_v57 = vor.u32 %v1548_v53, %v1546_v55  ;;  %v3869_v50 = vld [vmem:[%s3981_s22 + $0x70] sm:$0xff]  }
  0x7e   : > { %3650 = vmatprep.mubr.msk.bf16.mxu0 %vm404_vm2, %v1491_v39  ;;  %v1789_v39 = vrot.slane %v4192_v10, 1  ;;  %v1791_v10 = vrot.slane %v4204_v21, 1  ;;  %v1795_v21 = vrot.slane %v4226_v36, 1  ;;  %v1799_v36 = vrot.slane %v4258_v45, 1  ;;  %v2791_v55 = vld [vmem:[%s3981_s22 + $0x10] sm:$0xe] }
  0x7f   : > { %v1555_v61 = vsel %vm287_vm1, %v1550_v57, %v1554_v58  ;;  %v1803_v45 = vrot.slane %v4278_v63, 1  ;;  %v3881_v63 = vld [vmem:[%s3981_s22 + $0x48] sm:$0xff]  }
  0x80   : > { %v1790_v0 = vsel %vm778_vm3, %v1788_v28, %v1789_v39  ;;  %v1794_v24 = vsel %vm778_vm3, %v1791_v10, %v1793_v4  ;;  %v1796_v18 = vsel %vm778_vm3, %v1793_v4, %v1795_v21  ;;  %v1798_v20 = vsel %vm778_vm3, %v1795_v21, %v1797_v12  ;;  %v4425_v58 = vld [vmem:[%s3981_s22 + $0x28] sm:$0xff]   ;;  %v3886_v28 = vld [vmem:[%s3981_s22 + $0x70] sm:$0xff]  }
  0x81   : > { %v1800_v44 = vsel %vm778_vm3, %v1797_v12, %v1799_v36  ;;  %v2485_v12 = vshrl.u32 %v4425_v58, 16 }
  0x84   : > { %3625 = vmatmul.mubr.msk.bf16.gmra.mxu1 %vm404_vm2, %v3857_v9  ;;  %v1792_v9 = vsel %vm778_vm3, %v1789_v39, %v1791_v10  ;;  %v2473_v39 = vshll.u32 %v3890_v46, 16  ;;  %v4437_v10 = vld [vmem:[%s3981_s22 + $0x30] sm:$0xff]  }
  0x85   : > { %3651 = vmatmul.mubr.msk.bf16.gmra.mxu0 %vm404_vm2, %v1499_v8  ;;  %3628 = vmatprep.mubr.msk.bf16.mxu1 %vm404_vm2, %v3859_v16  ;;  %v1563_v8 = vsel %vm287_vm1, %v1558_v1, %v1562_v2  ;;  %v3876_v16 = vld [vmem:[%s3981_s22 + $0x20] sm:$0xff]   ;;  %v2489_v21 = vshll.u32 %v4437_v10, 16 }
  0x86   : > { %3654 = vmatprep.mubr.msk.bf16.mxu0 %vm404_vm2, %v1507_v11  ;;  %v2616_v11 = vsel %vm447_vm0, %v4232_v40, 0  ;;  %v2869_v40 = vsel %vm447_vm0, %v4254_v6, 0  ;;  %v1801_v6 = vrot.slane %v4263_v56, 1  ;;  %v3879_v56 = vld [vmem:[%s3981_s22 + $0x38] sm:$0xff]  }
  0x88   : > { %v1802_v25 = vsel %vm778_vm3, %v1799_v36, %v1801_v6  ;;  %v2800_v36 = vrot.slane %v3890_v46, 1 }
  0x8c   : > { %3629 = vmatmul.mubr.msk.bf16.gmra.mxu1 %vm404_vm2, %v3861_v30  ;;  %v1804_v30 = vsel %vm778_vm3, %v1801_v6, %v1803_v45 }
  0x8d   : > { %3655 = vmatmul.mubr.msk.bf16.gmra.mxu0 %vm404_vm2, %v1515_v26  ;;  %3632 = vmatprep.mubr.msk.bf16.mxu1 %vm404_vm2, %v3863_v32  ;;  %v1805_v26 = vrot.slane %v4283_v13, 1  ;;  %v1809_v13 = vrot.slane %v4301_v22, 1  ;;  %v2353_v32 = vld [vmem:[%s3981_s22 + $0x10] sm:$0xf]  ;;  %v3883_v22 = vld [vmem:[%s3981_s22 + $0x58] sm:$0xff]  }
  0x8e   : > { %3658 = vmatprep.mubr.msk.bf16.mxu0 %vm404_vm2, %v1523_v17  ;;  %v3338_v42 = vcombine.low %v2353_v32, %v2354_v34 }
  0x8f   : > { %v1806_v17 = vsel %vm778_vm3, %v1803_v45, %v1805_v26  ;;  %v1808_v38 = vsel %vm778_vm3, %v1805_v26, %v1807_v31  ;;  %v1810_v41 = vsel %vm778_vm3, %v1807_v31, %v1809_v13 }
  0x90   : > { %v2460_v49 = vshll.u32 %v3338_v42, 16  ;;  %v2458_v53 = vshrl.u32 %v3338_v42, 16 }
  0x92   : > { %v2462_v54 = vrot.slane %v2460_v49, 1 }
  0x94   : > { %3633 = vmatmul.mubr.msk.bf16.gmra.mxu1 %vm404_vm2, %v3865_v5  ;;  %v1812_v5 = vsel %vm778_vm3, %v1809_v13, %v1811_v19  ;;  %v2463_v15 = vor.u32 %v2462_v54, %v2458_v53  ;;  %v4498_v53 = vld [vmem:[%s3981_s22 + $0x50] sm:$0xff]  }
  0x95   : > { %3659 = vmatmul.mubr.msk.bf16.gmra.mxu0 %vm404_vm2, %v1531_v48  ;;  %3636 = vmatprep.mubr.msk.bf16.mxu1 %vm404_vm2, %v3867_v27  ;;  %v4410_v48 = vld [vmem:[%s3981_s22 + $0x18] sm:$0xff]   ;;  %v1815_v27 = vrot.slane %v4335_v33, 1 }
  0x96   : > { %3662 = vmatprep.mubr.msk.bf16.mxu0 %vm404_vm2, %v1539_v52  ;;  %v1814_v52 = vsel %vm778_vm3, %v1811_v19, %v1813_v47  ;;  %v2465_v35 = vshll.u32 %v4410_v48, 16  ;;  %v2469_v3 = vshrl.u32 %v4410_v48, 16  ;;  %v2798_v2 = vrot.slane %v4410_v48, 1 }
  0x97   : > { %v1816_v60 = vsel %vm778_vm3, %v1813_v47, %v1815_v27  ;;  %v2804_v48 = vrot.slane %v4437_v10, 1 }
  0x98   : > { %v2467_v57 = vrot.slane %v2465_v35, 1  ;;  %v2801_v31 = vsel %vm778_vm3, %v2798_v2, %v2800_v36 }
  0x9a   : > { %v2468_v33 = vsel %vm287_vm1, %v2463_v15, %v2467_v57  ;;  %v2471_v4 = vor.u32 %v2469_v3, %v2467_v57 }
  0x9c   : > { %3637 = vmatmul.mubr.msk.bf16.gmra.mxu1 %vm404_vm2, %v3869_v50  ;;  %v2477_v50 = vshrl.u32 %v3890_v46, 16 }
  0x9d   : > { %3663 = vmatmul.mubr.msk.bf16.gmra.mxu0 %vm404_vm2, %v1547_v59  ;;  %3672 = vmatprep.mubr.msk.bf16.mxu1 %vm404_vm2, %v1790_v0  ;;  %v3368_v59 = vcombine.low %v2791_v55, %v2354_v34  ;;  %v2475_v0 = vrot.slane %v2473_v39, 1  ;;  %v2521_v39 = vshll.u32 %v4498_v53, 16 }
  0x9e   : > { %3666 = vmatprep.mubr.msk.bf16.mxu0 %vm404_vm2, %v1555_v61  ;;  %v2481_v61 = vshll.u32 %v4425_v58, 16 }
  0x9f   : > { %v2797_v1 = vrot.slane %v3368_v59, 1 }
  0xa4   : > { %3673 = vmatmul.mubr.msk.bf16.vlgmr.msra.gmra.mxu1 %vm404_vm2, %v1792_v9  ;;  %v2483_v9 = vrot.slane %v2481_v61, 1  ;;  %v2525_v61 = vshrl.u32 %v4498_v53, 16 }
  0xa5   : > { %3667 = vmatmul.mubr.msk.bf16.gmra.mxu0 %vm404_vm2, %v1563_v8  ;;  %3731 = vmatpush3.bf16.msra.mxu1 %v2616_v11  ;;  %v3889_v8 = vld [vmem:[%s3981_s22 + $0x78] sm:$0xff]  }
  0xa6   : > { %3702 = vmatprep.mubr.msk.bf16.mxu0 %vm404_vm2, %v3874_v14  ;;  %3676 = vmatprep.mubr.msk.bf16.mxu1 %vm404_vm2, %v1794_v24  ;;  %v2479_v14 = vor.u32 %v2477_v50, %v2475_v0  ;;  %v4442_v11 = vld [vmem:[%s3981_s22 + $0x38] sm:$0xff]   ;;  %v2799_v24 = vsel %vm778_vm3, %v2797_v1, %v2798_v2  ;;  %v2487_v45 = vor.u32 %v2485_v12, %v2483_v9  ;;  %v4542_v12 = vld [vmem:[%s3981_s22 + $0x68] sm:$0xff]  }
  0xac   : > { %3677 = vmatmul.mubr.msk.bf16.gmra.mxu1 %vm404_vm2, %v1796_v18  ;;  %v2493_v18 = vshrl.u32 %v4437_v10, 16 }
  0xad   : > { %3703 = vmatmul.mubr.msk.bf16.vlgmr.msra.gmra.mxu0 %vm404_vm2, %v3875_v23  ;;  %3680 = vmatprep.mubr.msk.bf16.mxu1 %vm404_vm2, %v1798_v20  ;;  %v2476_v23 = vsel %vm287_vm1, %v2471_v4, %v2475_v0  ;;  %v2497_v20 = vshll.u32 %v4442_v11, 16  ;;  %v2523_v4 = vrot.slane %v2521_v39, 1  ;;  %v2549_v39 = vshrl.u32 %v4542_v12, 16 }
  0xae   : > { %3761 = vmatpush3.bf16.msra.mxu0 %v2869_v40  ;;  %3706 = vmatprep.mubr.msk.bf16.mxu0 %vm404_vm2, %v3876_v16  ;;  %v2484_v40 = vsel %vm287_vm1, %v2479_v14, %v2483_v9  ;;  %v4534_v14 = vld [vmem:[%s3981_s22 + $0x60] sm:$0xff]  }
  0xb4   : > { %3681 = vmatmul.mubr.msk.bf16.gmra.mxu1 %vm404_vm2, %v1800_v44  ;;  %v2802_v44 = vrot.slane %v4425_v58, 1 }
  0xb5   : > { %3707 = vmatmul.mubr.msk.bf16.gmra.mxu0 %vm404_vm2, %v3877_v43  ;;  %3684 = vmatprep.mubr.msk.bf16.mxu1 %vm404_vm2, %v1802_v25  ;;  %v4462_v25 = vld [vmem:[%s3981_s22 + $0x40] sm:$0xff]  }
  0xb6   : > { %3710 = vmatprep.mubr.msk.bf16.mxu0 %vm404_vm2, %v3878_v37  ;;  %v2491_v37 = vrot.slane %v2489_v21, 1  ;;  %v2505_v32 = vshll.u32 %v4462_v25, 16  ;;  %v2805_v15 = vsel %vm778_vm3, %v2802_v44, %v2804_v48  ;;  %v2808_v1 = vrot.slane %v4462_v25, 1 }
  0xb7   : > { %v2527_v21 = vor.u32 %v2525_v61, %v2523_v4 }
  0xb8   : > { %v2492_v34 = vsel %vm287_vm1, %v2487_v45, %v2491_v37 }
  0xbc   : > { %3685 = vmatmul.mubr.msk.bf16.gmra.mxu1 %vm404_vm2, %v1804_v30  ;;  %v2499_v30 = vrot.slane %v2497_v20, 1 }
  0xbd   : > { %3711 = vmatmul.mubr.msk.bf16.gmra.mxu0 %vm404_vm2, %v3879_v56  ;;  %3688 = vmatprep.mubr.msk.bf16.mxu1 %vm404_vm2, %v1806_v17  ;;  %v4470_v17 = vld [vmem:[%s3981_s22 + $0x48] sm:$0xff]  }
  0xbe   : > { %3714 = vmatprep.mubr.msk.bf16.mxu0 %vm404_vm2, %v3880_v29  ;;  %v2495_v29 = vor.u32 %v2493_v18, %v2491_v37  ;;  %v2513_v47 = vshll.u32 %v4470_v17, 16  ;;  %v2537_v37 = vshll.u32 %v4534_v14, 16 }
  0xc0   : > { %v2500_v19 = vsel %vm287_vm1, %v2495_v29, %v2499_v30  ;;  %v2515_v55 = vrot.slane %v2513_v47, 1 }
  0xc4   : > { %3689 = vmatmul.mubr.msk.bf16.gmra.mxu1 %vm404_vm2, %v1808_v38  ;;  %v2501_v38 = vshrl.u32 %v4442_v11, 16 }
  0xc5   : > { %3715 = vmatmul.mubr.msk.bf16.gmra.mxu0 %vm404_vm2, %v3881_v63  ;;  %3692 = vmatprep.mubr.msk.bf16.mxu1 %vm404_vm2, %v1810_v41 }
  0xc6   : > { %3718 = vmatprep.mubr.msk.bf16.mxu0 %vm404_vm2, %v3882_v62  ;;  %v2803_v62 = vsel %vm778_vm3, %v2800_v36, %v2802_v44  ;;  %v2503_v54 = vor.u32 %v2501_v38, %v2499_v30  ;;  %v2539_v38 = vrot.slane %v2537_v37, 1  ;;  %v2818_v37 = vrot.slane %v4542_v12, 1 }
  0xcc   : > { %3693 = vmatmul.mubr.msk.bf16.gmra.mxu1 %vm404_vm2, %v1812_v5  ;;  %v2507_v5 = vrot.slane %v2505_v32, 1 }
  0xcd   : > { %3719 = vmatmul.mubr.msk.bf16.gmra.mxu0 %vm404_vm2, %v3883_v22  ;;  %3696 = vmatprep.mubr.msk.bf16.mxu1 %vm404_vm2, %v1814_v52  ;;  %v2509_v22 = vshrl.u32 %v4462_v25, 16  ;;  %v2806_v52 = vrot.slane %v4442_v11, 1 }
  0xce   : > { %3722 = vmatprep.mubr.msk.bf16.mxu0 %vm404_vm2, %v3884_v51  ;;  %v2508_v59 = vsel %vm287_vm1, %v2503_v54, %v2507_v5 }
  0xcf   : > { %v2511_v27 = vor.u32 %v2509_v22, %v2507_v5  ;;  %v4568_v22 = vld [vmem:[%s3981_s22 + $0x70] sm:$0xff]  }
  0xd1   : > { %v2516_v50 = vsel %vm287_vm1, %v2511_v27, %v2515_v55  ;;  %v4575_v27 = vld [vmem:[%s3981_s22 + $0x78] sm:$0xff]  }
  0xd4   : > { %3697 = vmatmul.mubr.msk.bf16.gmra.mxu1 %vm404_vm2, %v1816_v60  ;;  %v2517_v60 = vshrl.u32 %v4470_v17, 16 }
  0xd5   : > { %3723 = vmatmul.mubr.msk.bf16.gmra.mxu0 %vm404_vm2, %v3885_v7  ;;  %3732 = vmatprep.mubr.msk.bf16.mxu1 %vm404_vm2, %v2468_v33  ;;  %v4506_v7 = vld [vmem:[%s3981_s22 + $0x58] sm:$0xff]  }
  0xd6   : > { %3726 = vmatprep.mubr.msk.bf16.mxu0 %vm404_vm2, %v3886_v28  ;;  %v2807_v28 = vsel %vm778_vm3, %v2804_v48, %v2806_v52  ;;  %v2529_v0 = vshll.u32 %v4506_v7, 16  ;;  %v2519_v9 = vor.u32 %v2517_v60, %v2515_v55  ;;  %v2533_v25 = vshrl.u32 %v4506_v7, 16 }
  0xd8   : > { %v2524_v44 = vsel %vm287_vm1, %v2519_v9, %v2523_v4  ;;  %v2561_v4 = vshll.u32 %v4575_v27, 16 }
  0xdc   : > { %v4455_v43 = vpop.f32.mrf.mxu1  ;;  %3733 = vmatmul.mubr.msk.bf16.vlgmr.msra.gmra.mxu1 %vm404_vm2, %v2476_v23  ;;  %v2531_v23 = vrot.slane %v2529_v0, 1 }
  0xdd   : > { %v4448_v16 = vpop.f32.mrf.mxu0  ;;  %3727 = vmatmul.mubr.msk.bf16.gmra.mxu0 %vm404_vm2, %v3889_v8  ;;  %3736 = vmatprep.mubr.msk.bf16.mxu1 %vm404_vm2, %v2484_v40  ;;  %v2810_v8 = vrot.slane %v4470_v17, 1  ;;  %v2809_v40 = vsel %vm778_vm3, %v2806_v52, %v2808_v1  ;;  %v2541_v17 = vshrl.u32 %v4534_v14, 16 }
  0xde   : > { %3762 = vmatprep.mubr.msk.bf16.mxu0 %vm404_vm2, %v2799_v24  ;;  %v4465_v56 = vpop.f32.mrf.mxu1  ;;  %v2532_v30 = vsel %vm287_vm1, %v2527_v21, %v2531_v23  ;;  %v2535_v48 = vor.u32 %v2533_v25, %v2531_v23 }
  0xdf   : > { %v4458_v6 = vpop.f32.mrf.mxu0  ;;  %v2811_v36 = vsel %vm778_vm3, %v2808_v1, %v2810_v8  ;;  %v2543_v54 = vor.u32 %v2541_v17, %v2539_v38  ;;  %v2557_v1 = vshrl.u32 %v4568_v22, 16 }
  0xe0   : > { %v4473_v63 = vpop.f32.mrf.mxu1 }
  0xe1   : > { %v4467_v26 = vpop.f32.mrf.mxu0 }
  0xe2   : > { %v4481_v41 = vpop.f32.mrf.mxu1 }
  0xe3   : > { %v4475_v13 = vpop.f32.mrf.mxu0 }
  0xe4   : > { %v4491_v49 = vpop.f32.mrf.mxu1  ;;  %3737 = vmatmul.mubr.msk.bf16.gmra.mxu1 %vm404_vm2, %v2492_v34 }
  0xe5   : > { %v4483_v42 = vpop.f32.mrf.mxu0  ;;  %3763 = vmatmul.mubr.msk.bf16.vlgmr.msra.gmra.mxu0 %vm404_vm2, %v2801_v31  ;;  %3740 = vmatprep.mubr.msk.bf16.mxu1 %vm404_vm2, %v2500_v19  ;;  %v2545_v31 = vshll.u32 %v4542_v12, 16  ;;  %v2814_v19 = vrot.slane %v4506_v7, 1 }
  0xe6   : > { %3766 = vmatprep.mubr.msk.bf16.mxu0 %vm404_vm2, %v2803_v62  ;;  %v4501_v35 = vpop.f32.mrf.mxu1  ;;  %v2812_v62 = vrot.slane %v4498_v53, 1 }
  0xe7   : > { %v4494_v51 = vpop.f32.mrf.mxu0  ;;  %v2547_v53 = vrot.slane %v2545_v31, 1 }
  0xe8   : > { %v4509_v57 = vpop.f32.mrf.mxu1 }
  0xe9   : > { %v4503_v46 = vpop.f32.mrf.mxu0 }
  0xea   : > { %v4517_v3 = vpop.f32.mrf.mxu1 }
  0xeb   : > { %v4511_v58 = vpop.f32.mrf.mxu0 }
  0xec   : > { %v4527_v2 = vpop.f32.mrf.mxu1  ;;  %3741 = vmatmul.mubr.msk.bf16.gmra.mxu1 %vm404_vm2, %v2508_v59  ;;  %v2553_v59 = vshll.u32 %v4568_v22, 16 }
  0xed   : > { %v4519_v33 = vpop.f32.mrf.mxu0  ;;  %3767 = vmatmul.mubr.msk.bf16.gmra.mxu0 %vm404_vm2, %v2805_v15  ;;  %3744 = vmatprep.mubr.msk.bf16.mxu1 %vm404_vm2, %v2516_v50  ;;  %v2813_v15 = vsel %vm778_vm3, %v2810_v8, %v2812_v62  ;;  %v2540_v50 = vsel %vm287_vm1, %v2535_v48, %v2539_v38 }
  0xee   : > { %3770 = vmatprep.mubr.msk.bf16.mxu0 %vm404_vm2, %v2807_v28  ;;  %v4537_v11 = vpop.f32.mrf.mxu1 }
  0xef   : > { %v4530_v10 = vpop.f32.mrf.mxu0 }
  0xf0   : > { %v4545_v18 = vpop.f32.mrf.mxu1 }
  0xf1   : > { %v4539_v24 = vpop.f32.mrf.mxu0 }
  0xf2   : > { %v4553_v45 = vpop.f32.mrf.mxu1 }
  0xf3   : > { %v4547_v20 = vpop.f32.mrf.mxu0 }
  0xf4   : > { %v3554_v32 = vpop.f32.mrf.mxu1  ;;  %3745 = vmatmul.mubr.msk.bf16.gmra.mxu1 %vm404_vm2, %v2524_v44 }
  0xf5   : > { %v4555_v29 = vpop.f32.mrf.mxu0  ;;  %3771 = vmatmul.mubr.msk.bf16.gmra.mxu0 %vm404_vm2, %v2809_v40  ;;  %v670_v47 = vadd.f32 %v3554_v32, %v4448_v16  ;;  %3748 = vmatprep.mubr.msk.bf16.mxu1 %vm404_vm2, %v2532_v30  ;;  %v2815_v16 = vsel %vm778_vm3, %v2812_v62, %v2814_v19  ;;  %v2551_v40 = vor.u32 %v2549_v39, %v2547_v53  ;;  %v2563_v62 = vrot.slane %v2561_v4, 1 }
  0xf6   : > { %3774 = vmatprep.mubr.msk.bf16.mxu0 %vm404_vm2, %v2811_v36  ;;  %v661_v5 = vpop.f32.mrf.mxu1  ;;  %v2555_v36 = vrot.slane %v2553_v59, 1 }
  0xf7   : > { %v4564_v34 = vpop.f32.mrf.mxu0  ;;  %v662_v55 = vadd.f32 %v661_v5, %v4458_v6  ;;  %v2548_v6 = vsel %vm287_vm1, %v2543_v54, %v2547_v53  ;;  %v2565_v53 = vshrl.u32 %v4575_v27, 16 }
  0xf8   : > { %v3555_v28 = vpop.f32.mrf.mxu1  ;;  %v2559_v31 = vor.u32 %v2557_v1, %v2555_v36  ;;  %v2556_v12 = vsel %vm287_vm1, %v2551_v40, %v2555_v36 }
  0xf9   : > { %v4572_v52 = vpop.f32.mrf.mxu0  ;;  %v673_v60 = vadd.f32 %v3555_v28, %v4467_v26  ;;  %v2816_v26 = vrot.slane %v4534_v14, 1 }
  0xfa   : > { %v664_v61 = vpop.f32.mrf.mxu1 }
  0xfb   : > { %v4579_v7 = vpop.f32.mrf.mxu0  ;;  %v665_v8 = vadd.f32 %v664_v61, %v4475_v13  ;;  %v3903_v13 = vld [vmem:[%s3981_s22 + $0x80] ss:$0 sps:$4 sm:$0x11]   ;;  %v2817_v38 = vsel %vm778_vm3, %v2814_v19, %v2816_v26 }
  0xfc   : > { %v3558_v21 = vpop.f32.mrf.mxu1  ;;  %3749 = vmatmul.mubr.msk.bf16.gmra.mxu1 %vm404_vm2, %v2540_v50 }
  0xfd   : > { %v3584_v0 = vpop.f32.mrf.mxu0  ;;  %3775 = vmatmul.mubr.msk.bf16.gmra.mxu0 %vm404_vm2, %v2813_v15  ;;  %v686_v44 = vadd.f32 %v3558_v21, %v4483_v42  ;;  %3752 = vmatprep.mubr.msk.bf16.mxu1 %vm404_vm2, %v2548_v6  ;;  %v2819_v42 = vsel %vm778_vm3, %v2816_v26, %v2818_v37 }
  0xfe   : > { %v4591_v9 = vadd.f32 %v3584_v0, %v670_v47  ;;  %3778 = vmatprep.mubr.msk.bf16.mxu0 %vm404_vm2, %v2815_v16  ;;  %v677_v30 = vpop.f32.mrf.mxu1  ;;  %v2820_v16 = vrot.slane %v4568_v22, 1  ;;  %v2567_v0 = vor.u32 %v2565_v53, %v2563_v62 }
  0xff   : > { %v887_v23 = vpop.f32.mrf.mxu0  ;;  %v678_v14 = vadd.f32 %v677_v30, %v4494_v51  ;;  %v2564_v51 = vsel %vm287_vm1, %v2559_v31, %v2563_v62 }
 0x100   : > { %v4598_v25 = vadd.f32 %v887_v23, %v662_v55  ;;  %v3559_v47 = vpop.f32.mrf.mxu1  ;;  %v2569_v55 = vshll.u32 %v3903_v13, 16  ;;  %v2821_v22 = vsel %vm778_vm3, %v2818_v37, %v2820_v16  ;;  %v2824_v37 = vrot.slane %v3903_v13, 1 }
 0x101   : > { %v3585_v17 = vpop.f32.mrf.mxu0  ;;  %v689_v5 = vadd.f32 %v3559_v47, %v4503_v46 }
 0x102   : > { %v4603_v32 = vadd.f32 %v3585_v17, %v673_v60  ;;  %v680_v15 = vpop.f32.mrf.mxu1  ;;  %v2822_v60 = vrot.slane %v4575_v27, 1 }
 0x103   : > { %v890_v48 = vpop.f32.mrf.mxu0  ;;  %v681_v19 = vadd.f32 %v680_v15, %v4511_v58  ;;  %v2571_v58 = vrot.slane %v2569_v55, 1 }
 0x104   : > { %v4609_v54 = vadd.f32 %v890_v48, %v665_v8  ;;  %v3562_v46 = vpop.f32.mrf.mxu1  ;;  %3753 = vmatmul.mubr.msk.bf16.gmra.mxu1 %vm404_vm2, %v2556_v12  ;;  %v2823_v27 = vsel %vm778_vm3, %v2820_v16, %v2822_v60 }
 0x105   : > { %v3588_v28 = vpop.f32.mrf.mxu0  ;;  %3779 = vmatmul.mubr.msk.bf16.gmra.mxu0 %vm404_vm2, %v2817_v38  ;;  %v702_v50 = vadd.f32 %v3562_v46, %v4519_v33  ;;  %3756 = vmatprep.mubr.msk.bf16.mxu1 %vm404_vm2, %v2564_v51  ;;  %v2572_v40 = vsel %vm287_vm1, %v2567_v0, %v2571_v58 }
 0x106   : > { %v4615_v39 = vadd.f32 %v3588_v28, %v686_v44  ;;  %3782 = vmatprep.mubr.msk.bf16.mxu0 %vm404_vm2, %v2819_v42  ;;  %v693_v6 = vpop.f32.mrf.mxu1 }
 0x107   : > { %v903_v59 = vpop.f32.mrf.mxu0  ;;  %v694_v4 = vadd.f32 %v693_v6, %v4530_v10 }
 0x108   : > { %v4622_v61 = vadd.f32 %v903_v59, %v678_v14  ;;  %v3563_v26 = vpop.f32.mrf.mxu1 }
 0x109   : > { %v3589_v1 = vpop.f32.mrf.mxu0  ;;  %v705_v33 = vadd.f32 %v3563_v26, %v4539_v24 }
 0x10a   : > { %v4626_v8 = vadd.f32 %v3589_v1, %v689_v5  ;;  %v696_v36 = vpop.f32.mrf.mxu1 }
 0x10b   : > { %v906_v21 = vpop.f32.mrf.mxu0  ;;  %v697_v10 = vadd.f32 %v696_v36, %v4547_v20  ;;  %v2825_v20 = vsel %vm778_vm3, %v2822_v60, %v2824_v37 }
 0x10c   : > { %v4631_v23 = vadd.f32 %v906_v21, %v681_v19  ;;  %v3566_v17 = vpop.f32.mrf.mxu1  ;;  %3757 = vmatmul.mubr.msk.bf16.gmra.mxu1 %vm404_vm2, %v2572_v40 }
 0x10d   : > { %v3592_v44 = vpop.f32.mrf.mxu0  ;;  %3783 = vmatmul.mubr.msk.bf16.gmra.mxu0 %vm404_vm2, %v2821_v22  ;;  %v718_v24 = vadd.f32 %v3566_v17, %v4555_v29 }
 0x10e   : > { %v4636_v30 = vadd.f32 %v3592_v44, %v702_v50  ;;  %3786 = vmatprep.mubr.msk.bf16.mxu0 %vm404_vm2, %v2823_v27  ;;  %v709_v14 = vpop.f32.mrf.mxu1 }
 0x10f   : > { %v919_v31 = vpop.f32.mrf.mxu0  ;;  %v710_v47 = vadd.f32 %v709_v14, %v4564_v34 }
 0x110   : > { %v4641_v62 = vadd.f32 %v919_v31, %v694_v4  ;;  %v3567_v12 = vpop.f32.mrf.mxu1 }
 0x111   : > { %v3593_v38 = vpop.f32.mrf.mxu0  ;;  %v721_v13 = vadd.f32 %v3567_v12, %v4572_v52 }
 0x112   : > { %v4644_v48 = vadd.f32 %v3593_v38, %v705_v33  ;;  %v712_v53 = vpop.f32.mrf.mxu1 }
 0x113   : > { %v922_v42 = vpop.f32.mrf.mxu0  ;;  %v713_v29 = vadd.f32 %v712_v53, %v4579_v7 }
 0x114   : > { %v4648_v5 = vadd.f32 %v922_v42, %v697_v10  ;;  %v3570_v28 = vpop.f32.mrf.mxu1 }
 0x115   : > { %v3596_v55 = vpop.f32.mrf.mxu0  ;;  %3787 = vmatmul.mubr.msk.bf16.gmra.mxu0 %vm404_vm2, %v2825_v20  ;;  %v734_v51 = vadd.f32 %v3570_v28, %v4455_v43 }
 0x116   : > { %v4652_v15 = vadd.f32 %v3596_v55, %v718_v24  ;;  %v725_v16 = vpop.f32.mrf.mxu1 }
 0x117   : > { %v935_v34 = vpop.f32.mrf.mxu0  ;;  %v726_v52 = vadd.f32 %v725_v16, %v4465_v56 }
 0x118   : > { %v4655_v19 = vadd.f32 %v935_v34, %v710_v47  ;;  %v3571_v60 = vpop.f32.mrf.mxu1 }
 0x119   : > { %v3597_v46 = vpop.f32.mrf.mxu0  ;;  %v737_v0 = vadd.f32 %v3571_v60, %v4473_v63 }
 0x11a   : > { %v4658_v59 = vadd.f32 %v3597_v46, %v721_v13  ;;  %v728_v7 = vpop.f32.mrf.mxu1 }
 0x11b   : > { %v938_v50 = vpop.f32.mrf.mxu0  ;;  %v729_v1 = vadd.f32 %v728_v7, %v4481_v41 }
 0x11c   : > { %v4661_v58 = vadd.f32 %v938_v50, %v713_v29  ;;  %v3574_v43 = vpop.f32.mrf.mxu1 }
 0x11d   : > { %v3600_v6 = vpop.f32.mrf.mxu0  ;;  %v750_v26 = vadd.f32 %v3574_v43, %v4491_v49 }
 0x11e   : > { %v4664_v4 = vadd.f32 %v3600_v6, %v734_v51  ;;  %v741_v56 = vpop.f32.mrf.mxu1 }
 0x11f   : > { %v951_v22 = vpop.f32.mrf.mxu0  ;;  %v742_v33 = vadd.f32 %v741_v56, %v4501_v35 }
 0x120   : > { %v4667_v21 = vadd.f32 %v951_v22, %v726_v52  ;;  %v3575_v63 = vpop.f32.mrf.mxu1 }
 0x121   : > { %v3601_v27 = vpop.f32.mrf.mxu0  ;;  %v753_v44 = vadd.f32 %v3575_v63, %v4509_v57 }
 0x122   : > { %v4670_v40 = vadd.f32 %v3601_v27, %v737_v0  ;;  %v744_v41 = vpop.f32.mrf.mxu1 }
 0x123   : > { %v954_v36 = vpop.f32.mrf.mxu0  ;;  %v745_v17 = vadd.f32 %v744_v41, %v4517_v3 }
 0x124   : > { %v4673_v10 = vadd.f32 %v954_v36, %v729_v1  ;;  %v3578_v49 = vpop.f32.mrf.mxu1 }
 0x125   : > { %v3604_v37 = vpop.f32.mrf.mxu0  ;;  %v766_v14 = vadd.f32 %v3578_v49, %v4527_v2 }
 0x126   : > { %v4676_v31 = vadd.f32 %v3604_v37, %v750_v26  ;;  %v757_v35 = vpop.f32.mrf.mxu1 }
 0x127   : > { %v967_v24 = vpop.f32.mrf.mxu0  ;;  %v758_v20 = vadd.f32 %v757_v35, %v4537_v11 }
 0x128   : > { %v4679_v38 = vadd.f32 %v967_v24, %v742_v33  ;;  %v3579_v57 = vpop.f32.mrf.mxu1 }
 0x129   : > { %v3605_v47 = vpop.f32.mrf.mxu0  ;;  %v769_v13 = vadd.f32 %v3579_v57, %v4545_v18 }
 0x12a   : > { %v4682_v12 = vadd.f32 %v3605_v47, %v753_v44  ;;  %v760_v3 = vpop.f32.mrf.mxu1 }
 0x12b   : > { %v970_v42 = vpop.f32.mrf.mxu0  ;;  %v761_v29 = vadd.f32 %v760_v3, %v4553_v45 }
 0x12c   : > { %v4685_v53 = vadd.f32 %v970_v42, %v745_v17  ;;  %v3614_v2 = vpop.f32.mrf.mxu1 }
 0x12d   : > { %v3608_v55 = vpop.f32.mrf.mxu0  ;;  %v1318_v51 = vadd.f32 %v3614_v2, %v4591_v9 }
 0x12e   : > { %v4688_v28 = vadd.f32 %v3608_v55, %v766_v14  ;;  %v1205_v11 = vpop.f32.mrf.mxu1 }
 0x12f   : > { %v983_v34 = vpop.f32.mrf.mxu0  ;;  %v1316_v52 = vadd.f32 %v1205_v11, %v4598_v25 }
 0x130   : > { %v4691_v16 = vadd.f32 %v983_v34, %v758_v20  ;;  %v3615_v18 = vpop.f32.mrf.mxu1 }
 0x131   : > { %v3609_v46 = vpop.f32.mrf.mxu0  ;;  %v1319_v0 = vadd.f32 %v3615_v18, %v4603_v32 }
 0x132   : > { %v4694_v60 = vadd.f32 %v3609_v46, %v769_v13  ;;  %v1208_v45 = vpop.f32.mrf.mxu1 }
 0x133   : > { %v986_v50 = vpop.f32.mrf.mxu0  ;;  %v1317_v1 = vadd.f32 %v1208_v45, %v4609_v54 }
 0x134   : > { %v4697_v7 = vadd.f32 %v986_v50, %v761_v29  ;;  %v3618_v9 = vpop.f32.mrf.mxu1 }
 0x135   : > { %v3644_v6 = vpop.f32.mrf.mxu0  ;;  %v1322_v26 = vadd.f32 %v3618_v9, %v4615_v39 }
 0x136   : > { %v4700_v43 = vadd.f32 %v3644_v6, %v1318_v51  ;;  %v1221_v25 = vpop.f32.mrf.mxu1 }
 0x137   : > { %v1643_v22 = vpop.f32.mrf.mxu0  ;;  %v1320_v33 = vadd.f32 %v1221_v25, %v4622_v61 }
 0x138   : > { %v4703_v56 = vadd.f32 %v1643_v22, %v1316_v52  ;;  %v3619_v32 = vpop.f32.mrf.mxu1 }
 0x139   : > { %v3645_v27 = vpop.f32.mrf.mxu0  ;;  %v1323_v44 = vadd.f32 %v3619_v32, %v4626_v8 }
 0x13a   : > { %v4706_v63 = vadd.f32 %v3645_v27, %v1319_v0  ;;  %v1224_v54 = vpop.f32.mrf.mxu1 }
 0x13b   : > { %v1646_v36 = vpop.f32.mrf.mxu0  ;;  %v1321_v17 = vadd.f32 %v1224_v54, %v4631_v23 }
 0x13c   : > { %v4709_v41 = vadd.f32 %v1646_v36, %v1317_v1  ;;  %v3622_v39 = vpop.f32.mrf.mxu1 }
 0x13d   : > { %v3648_v37 = vpop.f32.mrf.mxu0  ;;  %v1326_v14 = vadd.f32 %v3622_v39, %v4636_v30 }
 0x13e   : > { %v4712_v49 = vadd.f32 %v3648_v37, %v1322_v26  ;;  %v1237_v61 = vpop.f32.mrf.mxu1 }
 0x13f   : > { %v1659_v24 = vpop.f32.mrf.mxu0  ;;  %v1324_v20 = vadd.f32 %v1237_v61, %v4641_v62 }
 0x140   : > { %v4715_v35 = vadd.f32 %v1659_v24, %v1320_v33  ;;  %v3623_v8 = vpop.f32.mrf.mxu1 }
 0x141   : > { %v3649_v47 = vpop.f32.mrf.mxu0  ;;  %v1327_v13 = vadd.f32 %v3623_v8, %v4644_v48 }
 0x142   : > { %v4718_v57 = vadd.f32 %v3649_v47, %v1323_v44  ;;  %v1240_v23 = vpop.f32.mrf.mxu1 }
 0x143   : > { %v1662_v42 = vpop.f32.mrf.mxu0  ;;  %v1325_v29 = vadd.f32 %v1240_v23, %v4648_v5 }
 0x144   : > { %v4721_v3 = vadd.f32 %v1662_v42, %v1321_v17  ;;  %v3626_v30 = vpop.f32.mrf.mxu1 }
 0x145   : > { %v3652_v55 = vpop.f32.mrf.mxu0  ;;  %v1330_v51 = vadd.f32 %v3626_v30, %v4652_v15 }
 0x146   : > { %v4724_v2 = vadd.f32 %v3652_v55, %v1326_v14  ;;  %v1253_v62 = vpop.f32.mrf.mxu1 }
 0x147   : > { %v1675_v34 = vpop.f32.mrf.mxu0  ;;  %v1328_v52 = vadd.f32 %v1253_v62, %v4655_v19 }
 0x148   : > { %v4727_v11 = vadd.f32 %v1675_v34, %v1324_v20  ;;  %v3627_v48 = vpop.f32.mrf.mxu1 }
 0x149   : > { %v3653_v46 = vpop.f32.mrf.mxu0  ;;  %v1331_v0 = vadd.f32 %v3627_v48, %v4658_v59 }
 0x14a   : > { %v4730_v18 = vadd.f32 %v3653_v46, %v1327_v13  ;;  %v1256_v5 = vpop.f32.mrf.mxu1 }
 0x14b   : > { %v1678_v50 = vpop.f32.mrf.mxu0  ;;  %v1329_v1 = vadd.f32 %v1256_v5, %v4661_v58 }
 0x14c   : > { %v4733_v45 = vadd.f32 %v1678_v50, %v1325_v29  ;;  %v3630_v15 = vpop.f32.mrf.mxu1 }
 0x14d   : > { %v3656_v6 = vpop.f32.mrf.mxu0  ;;  %v1334_v26 = vadd.f32 %v3630_v15, %v4664_v4 }
 0x14e   : > { %v4736_v9 = vadd.f32 %v3656_v6, %v1330_v51  ;;  %v1269_v19 = vpop.f32.mrf.mxu1 }
 0x14f   : > { %v1691_v22 = vpop.f32.mrf.mxu0  ;;  %v1332_v33 = vadd.f32 %v1269_v19, %v4667_v21 }
 0x150   : > { %v4739_v25 = vadd.f32 %v1691_v22, %v1328_v52  ;;  %v3631_v59 = vpop.f32.mrf.mxu1 }
 0x151   : > { %v3657_v27 = vpop.f32.mrf.mxu0  ;;  %v1335_v44 = vadd.f32 %v3631_v59, %v4670_v40 }
 0x152   : > { %v4742_v32 = vadd.f32 %v3657_v27, %v1331_v0  ;;  %v1272_v58 = vpop.f32.mrf.mxu1 }
 0x153   : > { %v1694_v36 = vpop.f32.mrf.mxu0  ;;  %v1333_v17 = vadd.f32 %v1272_v58, %v4673_v10 }
 0x154   : > { %v4745_v54 = vadd.f32 %v1694_v36, %v1329_v1  ;;  %v3634_v4 = vpop.f32.mrf.mxu1 }
 0x155   : > { %v3660_v37 = vpop.f32.mrf.mxu0  ;;  %v1338_v14 = vadd.f32 %v3634_v4, %v4676_v31 }
 0x156   : > { %v4748_v39 = vadd.f32 %v3660_v37, %v1334_v26  ;;  %v1285_v21 = vpop.f32.mrf.mxu1 }
 0x157   : > { %v1707_v24 = vpop.f32.mrf.mxu0  ;;  %v1336_v20 = vadd.f32 %v1285_v21, %v4679_v38 }
 0x158   : > { %v4751_v61 = vadd.f32 %v1707_v24, %v1332_v33  ;;  %v3635_v40 = vpop.f32.mrf.mxu1 }
 0x159   : > { %v3661_v47 = vpop.f32.mrf.mxu0  ;;  %v1339_v13 = vadd.f32 %v3635_v40, %v4682_v12 }
 0x15a   : > { %v4754_v8 = vadd.f32 %v3661_v47, %v1335_v44  ;;  %v1288_v10 = vpop.f32.mrf.mxu1 }
 0x15b   : > { %v1710_v42 = vpop.f32.mrf.mxu0  ;;  %v1337_v29 = vadd.f32 %v1288_v10, %v4685_v53 }
 0x15c   : > { %5035 = vst [vmem:[#allocation2_spill] sm:$0xff] %v4754_v8  ;;  %v4757_v23 = vadd.f32 %v1710_v42, %v1333_v17  ;;  %v3638_v31 = vpop.f32.mrf.mxu1 }
 0x15d   : > { %v3664_v55 = vpop.f32.mrf.mxu0  ;;  %v1342_v51 = vadd.f32 %v3638_v31, %v4688_v28 }
 0x15e   : > { %5036 = vst [vmem:[#allocation3_spill] sm:$0xff] %v4757_v23  ;;  %v4760_v30 = vadd.f32 %v3664_v55, %v1338_v14  ;;  %v1301_v38 = vpop.f32.mrf.mxu1 }
 0x15f   : > { %v1723_v34 = vpop.f32.mrf.mxu0  ;;  %v1340_v52 = vadd.f32 %v1301_v38, %v4691_v16 }
 0x160   : > { %5037 = vst [vmem:[#allocation4_spill] sm:$0xff] %v4760_v30  ;;  %v4763_v62 = vadd.f32 %v1723_v34, %v1336_v20  ;;  %v3639_v12 = vpop.f32.mrf.mxu1 }
 0x161   : > { %v3665_v46 = vpop.f32.mrf.mxu0  ;;  %v1343_v0 = vadd.f32 %v3639_v12, %v4694_v60 }
 0x162   : > { %5038 = vst [vmem:[#allocation5_spill] sm:$0xff] %v4763_v62  ;;  %v4766_v48 = vadd.f32 %v3665_v46, %v1339_v13  ;;  %v1304_v53 = vpop.f32.mrf.mxu1 }
 0x163   : > { %v1726_v50 = vpop.f32.mrf.mxu0  ;;  %v1341_v1 = vadd.f32 %v1304_v53, %v4697_v7 }
 0x164   : > { %5039 = vst [vmem:[#allocation6_spill] sm:$0xff] %v4766_v48  ;;  %v4769_v5 = vadd.f32 %v1726_v50, %v1337_v29  ;;  %v3674_v28 = vpop.f32.mrf.mxu1 }
 0x165   : > { %v3668_v6 = vpop.f32.mrf.mxu0 }
 0x166   : > { %5040 = vst [vmem:[#allocation7_spill] sm:$0xff] %v4769_v5  ;;  %v4772_v15 = vadd.f32 %v3668_v6, %v1342_v51  ;;  %v1896_v19 = vpop.f32.mrf.mxu1 }
 0x167   : > { %v1739_v22 = vpop.f32.mrf.mxu0 }
 0x168   : > { %5041 = vst [vmem:[#allocation8_spill] sm:$0xff] %v4772_v15  ;;  %v4774_v26 = vadd.f32 %v1739_v22, %v1340_v52  ;;  %v4778_v33 = vpop.f32.mrf.mxu1 }
 0x169   : > { %v3669_v16 = vpop.f32.mrf.mxu0 }
 0x16a   : > { %5042 = vst [vmem:[#allocation9_spill] sm:$0xff] %v4774_v26  ;;  %v4776_v27 = vadd.f32 %v3669_v16, %v1343_v0  ;;  %v4782_v36 = vpop.f32.mrf.mxu1 }
 0x16b   : > { %v1742_v59 = vpop.f32.mrf.mxu0 }
 0x16c   : > { %5043 = vst [vmem:[#allocation10_spill] sm:$0xff] %v4776_v27  ;;  %v4780_v60 = vadd.f32 %v1742_v59, %v1341_v1  ;;  %v4784_v58 = vpop.f32.mrf.mxu1 }
 0x16d   : > { %v3704_v44 = vpop.f32.mrf.mxu0 }
 0x16e   : > { %5044 = vst [vmem:[#allocation11_spill] sm:$0xff] %v4780_v60  ;;  %v4786_v37 = vpop.f32.mrf.mxu1 }
 0x16f   : > { %v2214_v7 = vpop.f32.mrf.mxu0 }
 0x170   : > { %v4788_v4 = vpop.f32.mrf.mxu1 }
 0x171   : > { %v3705_v17 = vpop.f32.mrf.mxu0 }
 0x172   : > { %v4792_v14 = vpop.f32.mrf.mxu1 }
 0x173   : > { %v4790_v24 = vpop.f32.mrf.mxu0 }
 0x174   : > { %v4796_v47 = vpop.f32.mrf.mxu1 }
 0x175   : > { %v4794_v21 = vpop.f32.mrf.mxu0 }
 0x176   : > { %v4800_v40 = vpop.f32.mrf.mxu1 }
 0x177   : > { %v4798_v20 = vpop.f32.mrf.mxu0 }
 0x178   : > { %v4804_v13 = vpop.f32.mrf.mxu1 }
 0x179   : > { %v4802_v42 = vpop.f32.mrf.mxu0 }
 0x17a   : > { %v4808_v55 = vpop.f32.mrf.mxu1 }
 0x17b   : > { %v4806_v10 = vpop.f32.mrf.mxu0 }
 0x17c   : > { %v4812_v31 = vpop.f32.mrf.mxu1 }
 0x17d   : > { %v4810_v29 = vpop.f32.mrf.mxu0 }
 0x17e   : > { %v4816_v51 = vpop.f32.mrf.mxu1 }
 0x17f   : > { %v4814_v34 = vpop.f32.mrf.mxu0 }
 0x180   : > { %v4820_v46 = vpop.f32.mrf.mxu1 }
 0x181   : > { %v4818_v38 = vpop.f32.mrf.mxu0 }
 0x182   : > { %v4824_v12 = vpop.f32.mrf.mxu1 }
 0x183   : > { %v4822_v52 = vpop.f32.mrf.mxu0 }
 0x184   : > { %v4828_v0 = vpop.f32.mrf.mxu1 }
 0x185   : > { %v4826_v50 = vpop.f32.mrf.mxu0 }
 0x186   : > { %v4832_v6 = vpop.f32.mrf.mxu1 }
 0x187   : > { %v4830_v53 = vpop.f32.mrf.mxu0  ;;  %5045 = vst [vmem:[#allocation12_spill] sm:$0xff] %v4832_v6 }
 0x188   : > { %v4836_v22 = vpop.f32.mrf.mxu1 }
 0x189   : > { %v4834_v1 = vpop.f32.mrf.mxu0  ;;  %5046 = vst [vmem:[#allocation13_spill] sm:$0xff] %v4836_v22 }
 0x18a   : > { %v4840_v59 = vpop.f32.mrf.mxu1 }
 0x18b   : > { %v4838_v16 = vpop.f32.mrf.mxu0  ;;  %5047 = vst [vmem:[#allocation14_spill] sm:$0xff] %v4840_v59 }
 0x18c   : > { %v4844_v27 = vpop.f32.mrf.mxu1 }
 0x18d   : > { %v4842_v60 = vpop.f32.mrf.mxu0  ;;  %5049 = vst [vmem:[#allocation16_spill] sm:$0xff] %v4844_v27 }
 0x18e   : > { %5048 = vst [vmem:[#allocation15_spill] sm:$0xff] %v4842_v60  ;;  %v4848_v15 = vpop.f32.mrf.mxu1 }
 0x18f   : > { %v4846_v26 = vpop.f32.mrf.mxu0  ;;  %5051 = vst [vmem:[#allocation18_spill] sm:$0xff] %v4848_v15 }
 0x190   : > { %5050 = vst [vmem:[#allocation17_spill] sm:$0xff] %v4846_v26  ;;  %v4852_v48 = vpop.f32.mrf.mxu1 }
 0x191   : > { %v4850_v5 = vpop.f32.mrf.mxu0  ;;  %5053 = vst [vmem:[#allocation20_spill] sm:$0xff] %v4852_v48 }
 0x192   : > { %5052 = vst [vmem:[#allocation19_spill] sm:$0xff] %v4850_v5  ;;  %v4856_v30 = vpop.f32.mrf.mxu1 }
 0x193   : > { %v4854_v62 = vpop.f32.mrf.mxu0  ;;  %5055 = vst [vmem:[#allocation22_spill] sm:$0xff] %v4856_v30 }
 0x194   : > { %5054 = vst [vmem:[#allocation21_spill] sm:$0xff] %v4854_v62  ;;  %v4860_v59 = vpop.f32.mrf.mxu1 }
 0x195   : > { %v4858_v23 = vpop.f32.mrf.mxu0  ;;  %5057 = vst [vmem:[#allocation24_spill] sm:$0xff] %v4860_v59 }
 0x196   : > { %5056 = vst [vmem:[#allocation23_spill] sm:$0xff] %v4858_v23  ;;  %v4864_v27 = vpop.f32.mrf.mxu1  ;;  %v2009_v23 = vadd.f32 %v3674_v28, %v4700_v43 }
 0x197   : > { %v4862_v22 = vpop.f32.mrf.mxu0  ;;  %5059 = vst [vmem:[#allocation26_spill] sm:$0xff] %v4864_v27  ;;  %v2007_v27 = vadd.f32 %v1896_v19, %v4703_v56  ;;  %v2008_v56 = vadd.f32 %v4782_v36, %v4709_v41  ;;  %v2011_v41 = vadd.f32 %v4786_v37, %v4715_v35 }
 0x198   : > { %5058 = vst [vmem:[#allocation25_spill] sm:$0xff] %v4862_v22  ;;  %v4868_v15 = vpop.f32.mrf.mxu1 }
 0x199   : > { %v4866_v26 = vpop.f32.mrf.mxu0  ;;  %5061 = vst [vmem:[#allocation28_spill] sm:$0xff] %v4868_v15 }
 0x19a   : > { %5060 = vst [vmem:[#allocation27_spill] sm:$0xff] %v4866_v26  ;;  %v4872_v48 = vpop.f32.mrf.mxu1  ;;  %v2327_v26 = vadd.f32 %v3704_v44, %v2009_v23 }
 0x19b   : > { %v4870_v5 = vpop.f32.mrf.mxu0  ;;  %5063 = vst [vmem:[#allocation30_spill] sm:$0xff] %v4872_v48  ;;  %v2010_v48 = vadd.f32 %v4778_v33, %v4706_v63  ;;  %v2013_v63 = vadd.f32 %v4784_v58, %v4712_v49  ;;  %v2014_v58 = vadd.f32 %v4788_v4, %v4718_v57 }
 0x19c   : > { %5062 = vst [vmem:[#allocation29_spill] sm:$0xff] %v4870_v5  ;;  %v3734_v8 = vpop.f32.mrf.mxu1  ;;  %v2325_v5 = vadd.f32 %v2214_v7, %v2007_v27 }
 0x19d   : > { %v4874_v62 = vpop.f32.mrf.mxu0  ;;  %v2328_v23 = vadd.f32 %v3705_v17, %v2010_v48  ;;  %v2331_v48 = vadd.f32 %v4794_v21, %v2013_v63  ;;  %v2329_v17 = vadd.f32 %v4798_v20, %v2011_v41  ;;  %v2012_v21 = vadd.f32 %v4792_v14, %v4721_v3 }
 0x19e   : > { %5064 = vst [vmem:[#allocation31_spill] sm:$0xff] %v4874_v62  ;;  %v2652_v59 = vpop.f32.mrf.mxu1  ;;  %v2765_v62 = vadd.f32 %v3734_v8, %v2327_v26  ;;  %v2326_v8 = vadd.f32 %v4790_v24, %v2008_v56  ;;  %v2017_v20 = vadd.f32 %v4796_v47, %v4724_v2 }
 0x19f   : > { %v4876_v30 = vpop.f32.mrf.mxu0  ;;  %v2763_v28 = vadd.f32 %v2652_v59, %v2325_v5 }
 0x1a0   : > { %v3735_v22 = vpop.f32.mrf.mxu1 }
 0x1a1   : > { %v4879_v60 = vpop.f32.mrf.mxu0  ;;  %v2766_v26 = vadd.f32 %v3735_v22, %v2328_v23 }
 0x1a2   : > { %v2655_v6 = vpop.f32.mrf.mxu1 }
 0x1a3   : > { %v4883_v15 = vpop.f32.mrf.mxu0 }
 0x1a4   : > { %5065 = vst [vmem:[#allocation32_spill] sm:$0xff] %v4883_v15  ;;  %v3738_v44 = vpop.f32.mrf.mxu1 }
 0x1a5   : > { %v3764_v43 = vpop.f32.mrf.mxu0 }
 0x1a6   : > { %v3018_v19 = vadd.f32 %v3764_v43, %v2765_v62  ;;  %v2668_v33 = vpop.f32.mrf.mxu1  ;;  %v2764_v62 = vadd.f32 %v2655_v6, %v2326_v8  ;;  %v2332_v6 = vadd.f32 %v4802_v42, %v2014_v58  ;;  %v2330_v43 = vadd.f32 %v4806_v10, %v2012_v21 }
 0x1a7   : > { %v2905_v15 = vpop.f32.mrf.mxu0  ;;  %v2767_v22 = vadd.f32 %v2668_v33, %v2329_v17  ;;  %v2015_v42 = vadd.f32 %v4800_v40, %v4727_v11  ;;  %v2018_v10 = vadd.f32 %v4804_v13, %v4730_v18 }
 0x1a8   : > { %3046 = vst.msk [vmem:[%s4890_s14 + $0x10] sm:$0xff] %vm404_vm2, %v3018_v19  ;;  %v3016_v27 = vadd.f32 %v2905_v15, %v2763_v28  ;;  %v3739_v49 = vpop.f32.mrf.mxu1  ;;  %v2769_v15 = vadd.f32 %v3738_v44, %v2331_v48  ;;  %v2335_v28 = vadd.f32 %v4810_v29, %v2017_v20  ;;  %v2016_v29 = vadd.f32 %v4808_v55, %v4733_v45 }
 0x1a9   : > { %v3765_v7 = vpop.f32.mrf.mxu0  ;;  %v2770_v56 = vadd.f32 %v3739_v49, %v2332_v6  ;;  %v2333_v63 = vadd.f32 %v4814_v34, %v2015_v42  ;;  %v2021_v34 = vadd.f32 %v4812_v31, %v4736_v9 }
 0x1aa   : > { %3044 = vst.msk [vmem:[%s4890_s14] sm:$0xff] %vm404_vm2, %v3016_v27  ;;  %v3019_v5 = vadd.f32 %v3765_v7, %v2766_v26  ;;  %v2671_v35 = vpop.f32.mrf.mxu1  ;;  %v2336_v27 = vadd.f32 %v4818_v38, %v2018_v10  ;;  %v2334_v41 = vadd.f32 %v4822_v52, %v2016_v29  ;;  %v2019_v38 = vadd.f32 %v4816_v51, %v4739_v25  ;;  %v5073_v10 = vld [vmem:[#allocation19_spill] sm:$0xff]  ;;  %v5074_v29 = vld [vmem:[#allocation4_spill] sm:$0xff] }
 0x1ab   : > { %v2908_v36 = vpop.f32.mrf.mxu0  ;;  %v2768_v19 = vadd.f32 %v2671_v35, %v2330_v43  ;;  %v2022_v52 = vadd.f32 %v4820_v46, %v4742_v32 }
 0x1ac   : > { %3047 = vst.msk [vmem:[%s4890_s14 + $0x18] sm:$0xff] %vm404_vm2, %v3019_v5  ;;  %v3017_v24 = vadd.f32 %v2908_v36, %v2764_v62  ;;  %v3742_v57 = vpop.f32.mrf.mxu1  ;;  %v2339_v5 = vadd.f32 %v4826_v50, %v2021_v34  ;;  %v2337_v58 = vadd.f32 %v4830_v53, %v2019_v38  ;;  %v2020_v50 = vadd.f32 %v4824_v12, %v4745_v54  ;;  %v5079_v38 = vld [vmem:[#allocation23_spill] sm:$0xff] }
 0x1ad   : > { %v3768_v37 = vpop.f32.mrf.mxu0  ;;  %v2773_v8 = vadd.f32 %v3742_v57, %v2335_v28  ;;  %v2025_v53 = vadd.f32 %v4828_v0, %v4748_v39  ;;  %v5067_v57 = vld [vmem:[#allocation15_spill] sm:$0xff] }
 0x1ae   : > { %3045 = vst.msk [vmem:[%s4890_s14 + $0x8] sm:$0xff] %vm404_vm2, %v3017_v24  ;;  %v3022_v59 = vadd.f32 %v3768_v37, %v2769_v15  ;;  %v2684_v3 = vpop.f32.mrf.mxu1  ;;  %v2340_v24 = vadd.f32 %v4834_v1, %v2022_v52  ;;  %v2338_v21 = vadd.f32 %v4838_v16, %v2020_v50  ;;  %v5066_v1 = vld [vmem:[#allocation12_spill] sm:$0xff]  ;;  %v5068_v16 = vld [vmem:[#allocation2_spill] sm:$0xff] }
 0x1af   : > { %v2921_v4 = vpop.f32.mrf.mxu0  ;;  %v2771_v33 = vadd.f32 %v2684_v3, %v2333_v63  ;;  %v5070_v3 = vld [vmem:[#allocation17_spill] sm:$0xff]  ;;  %v5080_v52 = vld [vmem:[#allocation6_spill] sm:$0xff] }
 0x1b0   : > { %3050 = vst.msk [vmem:[%s4890_s14 + $0x30] sm:$0xff] %vm404_vm2, %v3022_v59  ;;  %v3020_v23 = vadd.f32 %v2921_v4, %v2767_v22  ;;  %v3743_v2 = vpop.f32.mrf.mxu1  ;;  %v2023_v59 = vadd.f32 %v5066_v1, %v4751_v61  ;;  %v2343_v4 = vadd.f32 %v5067_v57, %v2025_v53  ;;  %v5085_v53 = vld [vmem:[#allocation27_spill] sm:$0xff]  ;;  %v5086_v1 = vld [vmem:[#allocation8_spill] sm:$0xff] }
 0x1b1   : > { %v3769_v14 = vpop.f32.mrf.mxu0  ;;  %v2774_v48 = vadd.f32 %v3743_v2, %v2336_v27  ;;  %v5072_v2 = vld [vmem:[#allocation14_spill] sm:$0xff]  ;;  %v5075_v27 = vld [vmem:[#allocation16_spill] sm:$0xff] }
 0x1b2   : > { %3048 = vst.msk [vmem:[%s4890_s14 + $0x20] sm:$0xff] %vm404_vm2, %v3020_v23  ;;  %v3023_v44 = vadd.f32 %v3769_v14, %v2770_v56  ;;  %v2687_v11 = vpop.f32.mrf.mxu1  ;;  %v5069_v56 = vld [vmem:[#allocation13_spill] sm:$0xff]  ;;  %v2341_v14 = vadd.f32 %v5070_v3, %v2023_v59  ;;  %v5087_v59 = vld [vmem:[#allocation24_spill] sm:$0xff] }
 0x1b3   : > { %v2924_v47 = vpop.f32.mrf.mxu0  ;;  %v2772_v49 = vadd.f32 %v2687_v11, %v2334_v41  ;;  %v2026_v23 = vadd.f32 %v5069_v56, %v5068_v16  ;;  %v2033_v57 = vadd.f32 %v5087_v59, %v5086_v1  ;;  %v5089_v56 = vld [vmem:[#allocation9_spill] sm:$0xff] }
 0x1b4   : > { %3051 = vst.msk [vmem:[%s4890_s14 + $0x38] sm:$0xff] %vm404_vm2, %v3023_v44  ;;  %v3021_v26 = vadd.f32 %v2924_v47, %v2768_v19  ;;  %v3746_v18 = vpop.f32.mrf.mxu1  ;;  %v5071_v44 = vld [vmem:[#allocation3_spill] sm:$0xff] }
 0x1b5   : > { %v3772_v40 = vpop.f32.mrf.mxu0  ;;  %v2777_v17 = vadd.f32 %v3746_v18, %v2339_v5  ;;  %v2024_v47 = vadd.f32 %v5072_v2, %v5071_v44  ;;  %v2344_v63 = vadd.f32 %v5073_v10, %v2026_v23  ;;  %v5090_v23 = vld [vmem:[#allocation26_spill] sm:$0xff] }
 0x1b6   : > { %3049 = vst.msk [vmem:[%s4890_s14 + $0x28] sm:$0xff] %vm404_vm2, %v3021_v26  ;;  %v3026_v7 = vadd.f32 %v3772_v40, %v2773_v8  ;;  %v2700_v45 = vpop.f32.mrf.mxu1  ;;  %v2031_v3 = vadd.f32 %v5090_v23, %v5089_v56  ;;  %v5092_v2 = vld [vmem:[#allocation10_spill] sm:$0xff] }
 0x1b7   : > { %v2937_v13 = vpop.f32.mrf.mxu0  ;;  %v2775_v35 = vadd.f32 %v2700_v45, %v2337_v58  ;;  %v5078_v45 = vld [vmem:[#allocation18_spill] sm:$0xff]  ;;  %v5081_v58 = vld [vmem:[#allocation20_spill] sm:$0xff] }
 0x1b8   : > { %3054 = vst.msk [vmem:[%s4890_s14 + $0x50] sm:$0xff] %vm404_vm2, %v3026_v7  ;;  %v3024_v62 = vadd.f32 %v2937_v13, %v2771_v33  ;;  %v3747_v9 = vpop.f32.mrf.mxu1  ;;  %v2029_v33 = vadd.f32 %v5075_v27, %v5074_v29  ;;  %v5076_v7 = vld [vmem:[#allocation21_spill] sm:$0xff]  ;;  %v5095_v29 = vld [vmem:[#allocation30_spill] sm:$0xff] }
 0x1b9   : > { %v3773_v55 = vpop.f32.mrf.mxu0  ;;  %v2778_v6 = vadd.f32 %v3747_v9, %v2340_v24  ;;  %v2342_v18 = vadd.f32 %v5076_v7, %v2024_v47  ;;  %v5093_v47 = vld [vmem:[#allocation28_spill] sm:$0xff] }
 0x1ba   : > { %3052 = vst.msk [vmem:[%s4890_s14 + $0x40] sm:$0xff] %vm404_vm2, %v3024_v62  ;;  %v3027_v36 = vadd.f32 %v3773_v55, %v2774_v48  ;;  %v2703_v25 = vpop.f32.mrf.mxu1  ;;  %v5077_v62 = vld [vmem:[#allocation5_spill] sm:$0xff]  ;;  %v2347_v5 = vadd.f32 %v5079_v38, %v2029_v33  ;;  %v2034_v10 = vadd.f32 %v5093_v47, %v5092_v2 }
 0x1bb   : > { %v2940_v31 = vpop.f32.mrf.mxu0  ;;  %v2776_v20 = vadd.f32 %v2703_v25, %v2338_v21  ;;  %v2027_v55 = vadd.f32 %v5078_v45, %v5077_v62 }
 0x1bc   : > { %3055 = vst.msk [vmem:[%s4890_s14 + $0x58] sm:$0xff] %vm404_vm2, %v3027_v36  ;;  %v3025_v15 = vadd.f32 %v2940_v31, %v2772_v49  ;;  %v3750_v32 = vpop.f32.mrf.mxu1  ;;  %v2352_v33 = vadd.f32 %v4879_v60, %v2034_v10 }
 0x1bd   : > { %v3776_v51 = vpop.f32.mrf.mxu0  ;;  %v2781_v42 = vadd.f32 %v3750_v32, %v2343_v4  ;;  %v5084_v32 = vld [vmem:[#allocation22_spill] sm:$0xff]  ;;  %v5088_v4 = vld [vmem:[#allocation29_spill] sm:$0xff] }
 0x1be   : > { %3053 = vst.msk [vmem:[%s4890_s14 + $0x48] sm:$0xff] %vm404_vm2, %v3025_v15  ;;  %v3030_v37 = vadd.f32 %v3776_v51, %v2777_v17  ;;  %v2716_v54 = vpop.f32.mrf.mxu1  ;;  %v2030_v17 = vadd.f32 %v5081_v58, %v5080_v52  ;;  %v5082_v15 = vld [vmem:[#allocation25_spill] sm:$0xff] }
 0x1bf   : > { %v2953_v46 = vpop.f32.mrf.mxu0  ;;  %v2779_v8 = vadd.f32 %v2716_v54, %v2341_v14  ;;  %v2345_v25 = vadd.f32 %v5082_v15, %v2027_v55  ;;  %v5091_v14 = vld [vmem:[#allocation31_spill] sm:$0xff] }
 0x1c0   : > { %3058 = vst.msk [vmem:[%s4890_s14 + $0x70] sm:$0xff] %vm404_vm2, %v3030_v37  ;;  %v3028_v22 = vadd.f32 %v2953_v46, %v2775_v35  ;;  %v3751_v39 = vpop.f32.mrf.mxu1  ;;  %v5083_v37 = vld [vmem:[#allocation7_spill] sm:$0xff]  ;;  %v2348_v21 = vadd.f32 %v5085_v53, %v2030_v17 }
 0x1c1   : > { %v3777_v12 = vpop.f32.mrf.mxu0  ;;  %v2782_v13 = vadd.f32 %v3751_v39, %v2344_v63  ;;  %v2028_v46 = vadd.f32 %v5084_v32, %v5083_v37  ;;  %v2349_v63 = vadd.f32 %v4876_v30, %v2031_v3  ;;  %v5096_v30 = vld [vmem:[#allocation32_spill] sm:$0xff] }
 0x1c2   : > { %3056 = vst.msk [vmem:[%s4890_s14 + $0x60] sm:$0xff] %vm404_vm2, %v3028_v22  ;;  %v3031_v43 = vadd.f32 %v3777_v12, %v2778_v6  ;;  %v2719_v61 = vpop.f32.mrf.mxu1 }
 0x1c3   : > { %v2956_v0 = vpop.f32.mrf.mxu0  ;;  %v2780_v49 = vadd.f32 %v2719_v61, %v2342_v18 }
 0x1c4   : > { %3059 = vst.msk [vmem:[%s4890_s14 + $0x78] sm:$0xff] %vm404_vm2, %v3031_v43  ;;  %v3029_v28 = vadd.f32 %v2956_v0, %v2776_v20  ;;  %v3754_v11 = vpop.f32.mrf.mxu1  ;;  %v2346_v20 = vadd.f32 %v5088_v4, %v2028_v46 }
 0x1c5   : > { %v3780_v19 = vpop.f32.mrf.mxu0  ;;  %v2785_v51 = vadd.f32 %v3754_v11, %v2347_v5 }
 0x1c6   : > { %3057 = vst.msk [vmem:[%s4890_s14 + $0x68] sm:$0xff] %vm404_vm2, %v3029_v28  ;;  %v3034_v26 = vadd.f32 %v3780_v19, %v2781_v42  ;;  %v2732_v41 = vpop.f32.mrf.mxu1  ;;  %v2351_v42 = vadd.f32 %v5091_v14, %v2033_v57 }
 0x1c7   : > { %v2969_v40 = vpop.f32.mrf.mxu0  ;;  %v2783_v6 = vadd.f32 %v2732_v41, %v2345_v25 }
 0x1c8   : > { %3062 = vst.msk [vmem:[%s4890_s14 + $0x90] sm:$0xff] %vm404_vm2, %v3034_v26  ;;  %v3032_v34 = vadd.f32 %v2969_v40, %v2779_v8  ;;  %v3755_v9 = vpop.f32.mrf.mxu1  ;;  %v5094_v40 = vld [vmem:[#allocation11_spill] sm:$0xff] }
 0x1c9   : > { %v3781_v48 = vpop.f32.mrf.mxu0  ;;  %v2786_v43 = vadd.f32 %v3755_v9, %v2348_v21  ;;  %v2032_v27 = vadd.f32 %v5095_v29, %v5094_v40 }
 0x1ca   : > { %3060 = vst.msk [vmem:[%s4890_s14 + $0x80] sm:$0xff] %vm404_vm2, %v3032_v34  ;;  %v3035_v36 = vadd.f32 %v3781_v48, %v2782_v13  ;;  %v2735_v24 = vpop.f32.mrf.mxu1 }
 0x1cb   : > { %v2972_v31 = vpop.f32.mrf.mxu0  ;;  %v2784_v28 = vadd.f32 %v2735_v24, %v2346_v20  ;;  %v2350_v41 = vadd.f32 %v5096_v30, %v2032_v27 }
 0x1cc   : > { %3063 = vst.msk [vmem:[%s4890_s14 + $0x98] sm:$0xff] %vm404_vm2, %v3035_v36  ;;  %v3033_v50 = vadd.f32 %v2972_v31, %v2780_v49  ;;  %v3758_v54 = vpop.f32.mrf.mxu1 }
 0x1cd   : > { %v3784_v35 = vpop.f32.mrf.mxu0  ;;  %v2789_v8 = vadd.f32 %v3758_v54, %v2351_v42 }
 0x1ce   : > { %3061 = vst.msk [vmem:[%s4890_s14 + $0x88] sm:$0xff] %vm404_vm2, %v3033_v50  ;;  %v3038_v22 = vadd.f32 %v3784_v35, %v2785_v51  ;;  %v2748_v0 = vpop.f32.mrf.mxu1 }
 0x1cf   : > { %v2985_v12 = vpop.f32.mrf.mxu0  ;;  %v2787_v7 = vadd.f32 %v2748_v0, %v2349_v63 }
 0x1d0   : > { %3066 = vst.msk [vmem:[%s4890_s14 + $0xb0] sm:$0xff] %vm404_vm2, %v3038_v22  ;;  %v3036_v39 = vadd.f32 %v2985_v12, %v2783_v6  ;;  %v3759_v19 = vpop.f32.mrf.mxu1 }
 0x1d1   : > { %v3785_v16 = vpop.f32.mrf.mxu0  ;;  %v2790_v48 = vadd.f32 %v3759_v19, %v2352_v33 }
 0x1d2   : > { %3064 = vst.msk [vmem:[%s4890_s14 + $0xa0] sm:$0xff] %vm404_vm2, %v3036_v39  ;;  %v3039_v61 = vadd.f32 %v3785_v16, %v2786_v43  ;;  %v2751_v13 = vpop.f32.mrf.mxu1 }
 0x1d3   : > { %v2988_v44 = vpop.f32.mrf.mxu0  ;;  %v2788_v55 = vadd.f32 %v2751_v13, %v2350_v41 }
 0x1d4   : > { %3067 = vst.msk [vmem:[%s4890_s14 + $0xb8] sm:$0xff] %vm404_vm2, %v3039_v61  ;;  %v3037_v26 = vadd.f32 %v2988_v44, %v2784_v28 }
 0x1d5   : > { %v3788_v11 = vpop.f32.mrf.mxu0 }
 0x1d6   : > { %3065 = vst.msk [vmem:[%s4890_s14 + $0xa8] sm:$0xff] %vm404_vm2, %v3037_v26  ;;  %v3042_v18 = vadd.f32 %v3788_v11, %v2789_v8 }
 0x1d7   : > { %v3001_v34 = vpop.f32.mrf.mxu0 }
 0x1d8   : > { %3070 = vst.msk [vmem:[%s4890_s14 + $0xd0] sm:$0xff] %vm404_vm2, %v3042_v18  ;;  %v3040_v62 = vadd.f32 %v3001_v34, %v2787_v7 }
 0x1d9   : > { %v3789_v45 = vpop.f32.mrf.mxu0 }
 0x1da   : > { %3068 = vst.msk [vmem:[%s4890_s14 + $0xc0] sm:$0xff] %vm404_vm2, %v3040_v62  ;;  %v3043_v38 = vadd.f32 %v3789_v45, %v2790_v48 }
 0x1db   : > { %v3004_v5 = vpop.f32.mrf.mxu0 }
 0x1dc   : > { %3071 = vst.msk [vmem:[%s4890_s14 + $0xd8] sm:$0xff] %vm404_vm2, %v3043_v38  ;;  %v3041_v60 = vadd.f32 %v3004_v5, %v2788_v55 }
 0x1de   : > { %3069 = vst.msk [vmem:[%s4890_s14 + $0xc8] sm:$0xff] %vm404_vm2, %v3041_v60 }
 0x1df PF: > { %s12_s11 = sadd.s32 1, %s3926_s11   ;;  %s5097_s9 = smov %s3922_s10 }
 0x1e0   : > { %p9_p5 = scmp.ge.s32.totalorder %s12_s11, 4   ;;  %s5098_s10 = smov %s5100_s12 }
 0x1e2   :  { %11 = sbr.rel (!%p9_p5) target bundleno = 2 (0x2), region = 69 }

</bundles_post_ra>
